<compile_context>
chip_gen: v6e
topology: v6e:2x2x1
jax: 0.10.0
libtpu: 0.0.40
codegen_flags: <defaults>
</compile_context>

<pallas_src>
import numpy as np
import jax
import jax.numpy as jnp
from jax.experimental import pallas as pl
from jax.experimental.pallas import tpu as pltpu

EPS = 1e-5      # nn.BatchNorm1d default eps
SLOPE = 0.01    # nn.LeakyReLU default negative_slope

N_BATCH = 2
L_IN = 128                      # 128 -> 32 -> 16 -> 16 -> 8 -> 8 -> 4
C_MID = 6
L1, L2, L3, L_FLAT = 32, 16, 8, 4
LINEAR_INPUT_LENGTH = C_MID * L_FLAT            # 24

COLS0 = N_BATCH * L_IN          # 256
COLS1 = N_BATCH * L1            # 64
COLS2 = N_BATCH * L2            # 32
COLS3 = N_BATCH * L3            # 16
COLS4 = N_BATCH * L_FLAT        # 8

# --- consolidated small-selection buffer layout (row offset 0 for every sub-matrix) ---
SSEL_ROWS = COLS1
S32_OFF, S32_W = 0, 3 * COLS1                   # stride-1 conv shifts at L=32
P32_OFF, P32_W = S32_OFF + S32_W, 2 * COLS2     # pool 32 -> 16
S16_OFF, S16_W = P32_OFF + P32_W, 3 * COLS2     # stride-1 conv shifts at L=16
P16_OFF, P16_W = S16_OFF + S16_W, 2 * COLS3     # pool 16 -> 8
S8_OFF, S8_W = P16_OFF + P16_W, 3 * COLS3       # stride-1 conv shifts at L=8
P8_OFF, P8_W = S8_OFF + S8_W, 2 * COLS4         # pool 8 -> 4 (l-major output layout)
SSEL_COLS = P8_OFF + P8_W                       # 448

# --- packed conv-parameter buffer (C_MID rows) ---
CB_W0, CB_B0, CB_BCONV, CB_BD = 0, 1, 2, 8
CW_OFF = 16
N_CONV_SLOTS = 19               # 6 k=3 convs x 3 taps + 1 downsample 1x1 conv
PB6_COLS = CW_OFF + N_CONV_SLOTS * C_MID        # 130

# --- packed head-parameter buffer (16 rows) ---
H_W1 = 0                        # cols [0, 24): W1 repacked per flat-position l
H_B1 = LINEAR_INPUT_LENGTH      # 24
H_W2 = H_B1 + 1                 # 25  (BN16 folded into W2)
H_B2 = H_W2 + 1                 # 26  (row 0 only)
PB16_COLS = H_B2 + 1            # 27


# ----------------------------------------------------------------------------
# Pallas kernel: whole forward pass
# ----------------------------------------------------------------------------
def nn_forward_kernel(x_ref, s4_ref, ssel_ref, pc_ref, ph_ref, out_ref):
    f32 = jnp.float32

    def lrelu(v):
        return jnp.where(v >= 0, v, f32(SLOPE) * v)

    pc = pc_ref[...]                                      # (6, PB6_COLS)

    def cwk(i, k):                                        # folded conv weight (6, 6)
        c0 = CW_OFF + (i * 3 + k) * C_MID
        return pc[:, c0:c0 + C_MID]

    def bcol(i):                                          # folded conv bias (6, 1)
        return pc[:, CB_BCONV + i:CB_BCONV + i + 1]

    def conv_mix(i, taps, cols):
        # taps: (6, 3*cols) fused shift-matmul result; three tiny channel mixes.
        return (jnp.dot(cwk(i, 0), taps[:, 0:cols], preferred_element_type=f32)
                + jnp.dot(cwk(i, 1), taps[:, cols:2 * cols], preferred_element_type=f32)
                + jnp.dot(cwk(i, 2), taps[:, 2 * cols:3 * cols], preferred_element_type=f32)
                + bcol(i))

    x = x_ref[...]                                        # (1, N*128)

    # Conv1d(1, 6, k=1) + BatchNorm1d(6)  (BN folded into w0/b0)
    a = pc[:, CB_W0:CB_W0 + 1] * x + pc[:, CB_B0:CB_B0 + 1]          # (6, 256)

    # ---- ResidualBlock(6, 6, stride=4): L 128 -> 32 ----
    taps = jnp.dot(a, s4_ref[...], preferred_element_type=f32)       # (6, 192)
    y = lrelu(conv_mix(0, taps, COLS1))
    s32 = ssel_ref[0:COLS1, S32_OFF:S32_OFF + S32_W]                  # (64, 192)
    taps2 = jnp.dot(y, s32, preferred_element_type=f32)
    y = conv_mix(1, taps2, COLS1)
    # downsample 1x1 stride-4 conv: reuse the centre-tap block (== stride-4 subsample)
    wd = pc[:, CW_OFF + 18 * C_MID:CW_OFF + 19 * C_MID]               # (6, 6)
    d = jnp.dot(wd, taps[:, COLS1:2 * COLS1], preferred_element_type=f32) \
        + pc[:, CB_BD:CB_BD + 1]
    a = lrelu(y + d)                                                  # (6, 64)

    # MaxPool1d(2): 32 -> 16  (one fused selection matmul, max of lane halves)
    p32 = ssel_ref[0:COLS1, P32_OFF:P32_OFF + P32_W]                  # (64, 64)
    ap = jnp.dot(a, p32, preferred_element_type=f32)
    a = jnp.maximum(ap[:, 0:COLS2], ap[:, COLS2:])                    # (6, 32)

    # ---- ResidualBlock(6, 6) at L=16 ----
    s16 = ssel_ref[0:COLS2, S16_OFF:S16_OFF + S16_W]                  # (32, 96)
    taps = jnp.dot(a, s16, preferred_element_type=f32)
    y = lrelu(conv_mix(2, taps, COLS2))
    taps2 = jnp.dot(y, s16, preferred_element_type=f32)
    y = conv_mix(3, taps2, COLS2)
    a = lrelu(y + a)                                                  # (6, 32)

    # MaxPool1d(2): 16 -> 8
    p16 = ssel_ref[0:COLS2, P16_OFF:P16_OFF + P16_W]                  # (32, 32)
    ap = jnp.dot(a, p16, preferred_element_type=f32)
    a = jnp.maximum(ap[:, 0:COLS3], ap[:, COLS3:])                    # (6, 16)

    # ---- ResidualBlock(6, 6) at L=8 ----
    s8 = ssel_ref[0:COLS3, S8_OFF:S8_OFF + S8_W]                      # (16, 48)
    taps = jnp.dot(a, s8, preferred_element_type=f32)
    y = lrelu(conv_mix(4, taps, COLS3))
    taps2 = jnp.dot(y, s8, preferred_element_type=f32)
    y = conv_mix(5, taps2, COLS3)
    a = lrelu(y + a)                                                  # (6, 16)

    # MaxPool1d(2): 8 -> 4, emitting an l-major layout (column = l*N + n) so the
    # Flatten + Linear below is just 4 tiny channel mixes (no scatter/scratch).
    p8 = ssel_ref[0:COLS3, P8_OFF:P8_OFF + P8_W]                      # (16, 16)
    ap = jnp.dot(a, p8, preferred_element_type=f32)
    a = jnp.maximum(ap[:, 0:COLS4], ap[:, COLS4:])                    # (6, L_FLAT*N)

    # Flatten(start_dim=1) + Linear(24, 16) + LeakyReLU
    ph = ph_ref[...]                                                  # (16, PB16_COLS)
    h = ph[:, H_B1:H_B1 + 1]                                          # (16, 1) bias
    for l in range(L_FLAT):
        w1l = ph[:, H_W1 + l * C_MID:H_W1 + (l + 1) * C_MID]          # (16, 6)
        h = h + jnp.dot(w1l, a[:, l * N_BATCH:(l + 1) * N_BATCH],
                        preferred_element_type=f32)                   # (16, N)
    h = lrelu(h)

    # BatchNorm1d(16) folded into Linear(16, 1); Sigmoid via EUP reciprocal
    w2col = ph[:, H_W2:H_W2 + 1]                                      # (16, 1)
    b2f = ph[0:1, H_B2:H_B2 + 1]                                      # (1, 1)
    z = jnp.sum(h * w2col, axis=0, keepdims=True) + b2f               # (1, N)
    out_ref[...] = pl.reciprocal(1.0 + jnp.exp(-z), approx=True)


# ----------------------------------------------------------------------------
# Glue: selection matrices, BN folding, parameter packing, pallas_call
# ----------------------------------------------------------------------------
def build_shift_matrix(L_in, L_out, stride, offset):
    m = np.zeros((L_in, L_out), np.float32)
    for l in range(L_out):
        src = stride * l + offset
        if 0 <= src < L_in:
            m[src, l] = 1.0
    return m


def block_diag(mat, n):
    Li, Lo = mat.shape
    out = np.zeros((n * Li, n * Lo), np.float32)
    for i in range(n):
        out[i * Li:(i + 1) * Li, i * Lo:(i + 1) * Lo] = mat
    return out


def conv3_shifts_cat(L_in, L_out, stride, n_batch):
    # taps k = 0,1,2 with padding=1 -> src = stride*l + k - 1, lane-concatenated
    return np.concatenate(
        [block_diag(build_shift_matrix(L_in, L_out, stride, k - 1), n_batch)
         for k in range(3)], axis=1)


def pool_mats_cat(L_in, n_batch):
    L_out = L_in // 2
    return np.concatenate(
        [block_diag(build_shift_matrix(L_in, L_out, 2, off), n_batch)
         for off in range(2)], axis=1)


def pool_mats_cat_lmajor(L_in, n_batch):
    # output column index = l*n_batch + n (length-major), input column = n*L_in + src
    L_out = L_in // 2
    mats = []
    for off in range(2):
        m = np.zeros((n_batch * L_in, L_out * n_batch), np.float32)
        for n in range(n_batch):
            for l in range(L_out):
                m[n * L_in + 2 * l + off, l * n_batch + n] = 1.0
        mats.append(m)
    return np.concatenate(mats, axis=1)


def fold_conv_bn(w, b, bn):
    # y = BN(conv(x)) in eval mode  ==  conv with w' = s*w, b' = s*(b-mean)+beta
    s = (bn['gamma'] / np.sqrt(bn['var'] + EPS)).astype(np.float32)
    return (w * s[:, None, None]).astype(np.float32), \
           ((b - bn['mean']) * s + bn['beta']).astype(np.float32)


def init_params(key):
    keys = iter(jax.random.split(key, 64))

    def nrm(shape, scale=0.1):
        return np.asarray(jax.random.normal(next(keys), shape, jnp.float32) * scale,
                          np.float32)

    def bn_params(c):
        return dict(gamma=np.float32(1.0) + nrm((c,)),
                    beta=nrm((c,)),
                    mean=nrm((c,)),
                    var=np.float32(1.0) + np.abs(nrm((c,))).astype(np.float32))

    def resblock(c, downsample):
        blk = dict(w1=nrm((c, c, 3), 0.3), b1=nrm((c,), 0.3), bn1=bn_params(c),
                   w2=nrm((c, c, 3), 0.3), b2=nrm((c,), 0.3), bn2=bn_params(c))
        if downsample:
            blk.update(wd=nrm((c, c, 1), 0.3), bd=nrm((c,), 0.3), bnd=bn_params(c))
        return blk

    p = dict(w0=nrm((6, 1, 1), 0.5), b0=nrm((6,), 0.5), bn0=bn_params(6),
             blk1=resblock(6, True), blk2=resblock(6, False), blk3=resblock(6, False),
             W1=nrm((16, LINEAR_INPUT_LENGTH), 0.2), b1=nrm((16,), 0.2),
             bn16=bn_params(16), W2=nrm((1, 16), 0.2), b2=nrm((1,), 0.2))
    return p


def pack_inputs(x, p):
    N, _, L = x.shape
    assert N == N_BATCH and L == L_IN
    x2d = np.transpose(np.asarray(x, np.float32), (1, 0, 2)).reshape(1, N * L)

    # --- selection matrices ---
    s4cat = conv3_shifts_cat(L_IN, L1, 4, N)                          # (256, 192)
    ssel = np.zeros((SSEL_ROWS, SSEL_COLS), np.float32)
    ssel[:COLS1, S32_OFF:S32_OFF + S32_W] = conv3_shifts_cat(L1, L1, 1, N)
    ssel[:COLS1, P32_OFF:P32_OFF + P32_W] = pool_mats_cat(L1, N)
    ssel[:COLS2, S16_OFF:S16_OFF + S16_W] = conv3_shifts_cat(L2, L2, 1, N)
    ssel[:COLS2, P16_OFF:P16_OFF + P16_W] = pool_mats_cat(L2, N)
    ssel[:COLS3, S8_OFF:S8_OFF + S8_W] = conv3_shifts_cat(L3, L3, 1, N)
    ssel[:COLS3, P8_OFF:P8_OFF + P8_W] = pool_mats_cat_lmajor(L3, N)

    # --- conv-stack parameters (BN folded), one (6, PB6_COLS) buffer ---
    pc = np.zeros((C_MID, PB6_COLS), np.float32)
    w0f, b0f = fold_conv_bn(p['w0'], p['b0'], p['bn0'])
    pc[:, CB_W0] = w0f[:, 0, 0]
    pc[:, CB_B0] = b0f
    convs = [(p['blk1']['w1'], p['blk1']['b1'], p['blk1']['bn1']),
             (p['blk1']['w2'], p['blk1']['b2'], p['blk1']['bn2']),
             (p['blk2']['w1'], p['blk2']['b1'], p['blk2']['bn1']),
             (p['blk2']['w2'], p['blk2']['b2'], p['blk2']['bn2']),
             (p['blk3']['w1'], p['blk3']['b1'], p['blk3']['bn1']),
             (p['blk3']['w2'], p['blk3']['b2'], p['blk3']['bn2'])]
    for i, (w, b, bn) in enumerate(convs):
        wf, bf = fold_conv_bn(w, b, bn)
        pc[:, CB_BCONV + i] = bf
        for k in range(3):
            c0 = CW_OFF + (i * 3 + k) * C_MID
            pc[:, c0:c0 + C_MID] = wf[:, :, k]
    wdf, bdf = fold_conv_bn(p['blk1']['wd'], p['blk1']['bd'], p['blk1']['bnd'])
    pc[:, CB_BD] = bdf
    pc[:, CW_OFF + 18 * C_MID:CW_OFF + 19 * C_MID] = wdf[:, :, 0]

    # --- head parameters (W1 repacked per flat position, BN16 folded into W2) ---
    ph = np.zeros((16, PB16_COLS), np.float32)
    W1r = p['W1'].reshape(16, C_MID, L_FLAT)
    for l in range(L_FLAT):
        ph[:, H_W1 + l * C_MID:H_W1 + (l + 1) * C_MID] = W1r[:, :, l]
    ph[:, H_B1] = p['b1']
    s16 = p['bn16']['gamma'] / np.sqrt(p['bn16']['var'] + EPS)
    t16 = p['bn16']['beta'] - p['bn16']['mean'] * s16
    W2f = p['W2'] * s16[None, :]                                      # (1, 16)
    b2f = (p['W2'] @ t16 + p['b2'])[0]
    ph[:, H_W2] = W2f[0, :]
    ph[0, H_B2] = b2f

    return [x2d, s4cat, ssel, pc, ph]


def neural_network_forward(x, params):
    inputs = [jnp.asarray(a, jnp.float32) for a in pack_inputs(np.asarray(x), params)]
    out = pl.pallas_call(
        nn_forward_kernel,
        out_shape=jax.ShapeDtypeStruct((1, N_BATCH), jnp.float32),    # lane-dense output
        in_specs=[pl.BlockSpec(memory_space=pltpu.MemorySpace.VMEM)] * len(inputs),
        out_specs=pl.BlockSpec(memory_space=pltpu.MemorySpace.VMEM),
    )(*inputs)
    return out.T                                                      # (N, 1) like the module


# ----------------------------------------------------------------------------
# Pure numpy reference (mirrors the PyTorch module, eval-mode BatchNorm)
# ----------------------------------------------------------------------------
def ref_forward(x, p):
    x = np.asarray(x, np.float32)

    def lrelu(v):
        return np.where(v >= 0, v, SLOPE * v).astype(np.float32)

    def bn_ncl(v, bn):
        g, b, m, var = bn['gamma'], bn['beta'], bn['mean'], bn['var']
        return ((v - m[None, :, None]) / np.sqrt(var[None, :, None] + EPS)
                * g[None, :, None] + b[None, :, None]).astype(np.float32)

    def conv1d(v, w, b, stride, pad):
        N, Cin, L = v.shape
        Cout, _, K = w.shape
        Lout = (L + 2 * pad - K) // stride + 1
        vp = np.pad(v, ((0, 0), (0, 0), (pad, pad)))
        out = np.zeros((N, Cout, Lout), np.float32)
        for l in range(Lout):
            patch = vp[:, :, stride * l:stride * l + K]
            out[:, :, l] = np.einsum('nck,ock->no', patch, w) + b[None, :]
        return out

    def maxpool2(v):
        N, C, L = v.shape
        return v[:, :, :(L // 2) * 2].reshape(N, C, L // 2, 2).max(-1)

    def resblock(v, blk, stride):
        y = conv1d(v, blk['w1'], blk['b1'], stride, 1)
        y = lrelu(bn_ncl(y, blk['bn1']))
        y = conv1d(y, blk['w2'], blk['b2'], 1, 1)
        y = bn_ncl(y, blk['bn2'])
        if 'wd' in blk:
            d = bn_ncl(conv1d(v, blk['wd'], blk['bd'], stride, 0), blk['bnd'])
        else:
            d = v
        return lrelu(y + d)

    a = bn_ncl(conv1d(x, p['w0'], p['b0'], 1, 0), p['bn0'])
    a = maxpool2(resblock(a, p['blk1'], 4))
    a = maxpool2(resblock(a, p['blk2'], 1))
    a = maxpool2(resblock(a, p['blk3'], 1))
    flat = a.reshape(x.shape[0], -1)
    h = lrelu(flat @ p['W1'].T + p['b1'][None, :])
    bn = p['bn16']
    h = (h - bn['mean'][None, :]) / np.sqrt(bn['var'][None, :] + EPS) \
        * bn['gamma'][None, :] + bn['beta'][None, :]
    z = h @ p['W2'].T + p['b2'][None, :]
    return 1.0 / (1.0 + np.exp(-z))


if __name__ == "__main__":
    key = jax.random.PRNGKey(0)
    pkey, xkey = jax.random.split(key)
    params = init_params(pkey)
    x = jax.random.normal(xkey, (N_BATCH, 1, L_IN), jnp.float32)      # NCL input

    out = neural_network_forward(x, params)
    out = jax.block_until_ready(out)

    ref = ref_forward(np.asarray(x), params)
    assert out.shape == (N_BATCH, 1)
    np.testing.assert_allclose(np.asarray(out), ref, rtol=2e-3, atol=2e-3)
    print("KERNEL_OK")
</pallas_src>

<mosaic_0001>
module attributes {stable_mosaic.version = 11 : i64} {
  func.func @nn_forward_kernel(%arg0: memref<1x256xf32, #tpu.memory_space<vmem>>, %arg1: memref<256x192xf32, #tpu.memory_space<vmem>>, %arg2: memref<64x448xf32, #tpu.memory_space<vmem>>, %arg3: memref<6x130xf32, #tpu.memory_space<vmem>>, %arg4: memref<16x27xf32, #tpu.memory_space<vmem>>, %arg5: memref<1x2xf32, #tpu.memory_space<vmem>>) attributes {dimension_semantics = [], scalar_prefetch = 0 : i64, scratch_operands = 0 : i64, tpu.core_type = #tpu.core_type<tc>} {
    %c0 = arith.constant 0 : index
    %c0_0 = arith.constant 0 : index
    %0 = vector.load %arg3[%c0, %c0_0] : memref<6x130xf32, #tpu.memory_space<vmem>>, vector<6x130xf32>
    %c0_1 = arith.constant 0 : index
    %c0_2 = arith.constant 0 : index
    %1 = vector.load %arg0[%c0_1, %c0_2] : memref<1x256xf32, #tpu.memory_space<vmem>>, vector<1x256xf32>
    %2 = vector.extract_strided_slice %0 {offsets = [0, 0], sizes = [6, 1], strides = [1, 1]} : vector<6x130xf32> to vector<6x1xf32>
    %3 = vector.broadcast %2 : vector<6x1xf32> to vector<6x256xf32>
    %4 = vector.broadcast %1 : vector<1x256xf32> to vector<6x256xf32>
    %5 = arith.mulf %3, %4 : vector<6x256xf32>
    %6 = vector.extract_strided_slice %0 {offsets = [0, 1], sizes = [6, 1], strides = [1, 1]} : vector<6x130xf32> to vector<6x1xf32>
    %7 = vector.broadcast %6 : vector<6x1xf32> to vector<6x256xf32>
    %8 = arith.addf %5, %7 : vector<6x256xf32>
    %c0_3 = arith.constant 0 : index
    %c0_4 = arith.constant 0 : index
    %9 = vector.load %arg1[%c0_3, %c0_4] : memref<256x192xf32, #tpu.memory_space<vmem>>, vector<256x192xf32>
    %cst = arith.constant dense<0.000000e+00> : vector<6x192xf32>
    %10 = tpu.matmul %8, %9, %cst {dimension_numbers = #tpu.dot_dimension_numbers<[1], [0], [0], [1], [0, 0, 1, 1], [], []>} : vector<6x256xf32>, vector<256x192xf32>, vector<6x192xf32> -> vector<6x192xf32>
    %11 = vector.extract_strided_slice %0 {offsets = [0, 16], sizes = [6, 6], strides = [1, 1]} : vector<6x130xf32> to vector<6x6xf32>
    %12 = vector.extract_strided_slice %10 {offsets = [0, 0], sizes = [6, 64], strides = [1, 1]} : vector<6x192xf32> to vector<6x64xf32>
    %cst_5 = arith.constant dense<0.000000e+00> : vector<6x64xf32>
    %13 = tpu.matmul %11, %12, %cst_5 {dimension_numbers = #tpu.dot_dimension_numbers<[1], [0], [0], [1], [0, 0, 1, 1], [], []>} : vector<6x6xf32>, vector<6x64xf32>, vector<6x64xf32> -> vector<6x64xf32>
    %14 = vector.extract_strided_slice %0 {offsets = [0, 22], sizes = [6, 6], strides = [1, 1]} : vector<6x130xf32> to vector<6x6xf32>
    %15 = vector.extract_strided_slice %10 {offsets = [0, 64], sizes = [6, 64], strides = [1, 1]} : vector<6x192xf32> to vector<6x64xf32>
    %cst_6 = arith.constant dense<0.000000e+00> : vector<6x64xf32>
    %16 = tpu.matmul %14, %15, %cst_6 {dimension_numbers = #tpu.dot_dimension_numbers<[1], [0], [0], [1], [0, 0, 1, 1], [], []>} : vector<6x6xf32>, vector<6x64xf32>, vector<6x64xf32> -> vector<6x64xf32>
    %17 = arith.addf %13, %16 : vector<6x64xf32>
    %18 = vector.extract_strided_slice %0 {offsets = [0, 28], sizes = [6, 6], strides = [1, 1]} : vector<6x130xf32> to vector<6x6xf32>
    %19 = vector.extract_strided_slice %10 {offsets = [0, 128], sizes = [6, 64], strides = [1, 1]} : vector<6x192xf32> to vector<6x64xf32>
    %cst_7 = arith.constant dense<0.000000e+00> : vector<6x64xf32>
    %20 = tpu.matmul %18, %19, %cst_7 {dimension_numbers = #tpu.dot_dimension_numbers<[1], [0], [0], [1], [0, 0, 1, 1], [], []>} : vector<6x6xf32>, vector<6x64xf32>, vector<6x64xf32> -> vector<6x64xf32>
    %21 = arith.addf %17, %20 : vector<6x64xf32>
    %22 = vector.extract_strided_slice %0 {offsets = [0, 2], sizes = [6, 1], strides = [1, 1]} : vector<6x130xf32> to vector<6x1xf32>
    %23 = vector.broadcast %22 : vector<6x1xf32> to vector<6x64xf32>
    %24 = arith.addf %21, %23 : vector<6x64xf32>
    %cst_8 = arith.constant 0.000000e+00 : f32
    %25 = vector.broadcast %cst_8 : f32 to vector<6x64xf32>
    %26 = arith.cmpf oge, %24, %25 : vector<6x64xf32>
    %cst_9 = arith.constant 0.00999999977 : f32
    %27 = vector.broadcast %cst_9 : f32 to vector<6x64xf32>
    %28 = arith.mulf %27, %24 : vector<6x64xf32>
    %29 = arith.select %26, %24, %28 : vector<6x64xi1>, vector<6x64xf32>
    %c0_10 = arith.constant 0 : index
    %c0_11 = arith.constant 0 : index
    %30 = vector.load %arg2[%c0_10, %c0_11] : memref<64x448xf32, #tpu.memory_space<vmem>>, vector<64x192xf32>
    %cst_12 = arith.constant dense<0.000000e+00> : vector<6x192xf32>
    %31 = tpu.matmul %29, %30, %cst_12 {dimension_numbers = #tpu.dot_dimension_numbers<[1], [0], [0], [1], [0, 0, 1, 1], [], []>} : vector<6x64xf32>, vector<64x192xf32>, vector<6x192xf32> -> vector<6x192xf32>
    %32 = vector.extract_strided_slice %0 {offsets = [0, 34], sizes = [6, 6], strides = [1, 1]} : vector<6x130xf32> to vector<6x6xf32>
    %33 = vector.extract_strided_slice %31 {offsets = [0, 0], sizes = [6, 64], strides = [1, 1]} : vector<6x192xf32> to vector<6x64xf32>
    %cst_13 = arith.constant dense<0.000000e+00> : vector<6x64xf32>
    %34 = tpu.matmul %32, %33, %cst_13 {dimension_numbers = #tpu.dot_dimension_numbers<[1], [0], [0], [1], [0, 0, 1, 1], [], []>} : vector<6x6xf32>, vector<6x64xf32>, vector<6x64xf32> -> vector<6x64xf32>
    %35 = vector.extract_strided_slice %0 {offsets = [0, 40], sizes = [6, 6], strides = [1, 1]} : vector<6x130xf32> to vector<6x6xf32>
    %36 = vector.extract_strided_slice %31 {offsets = [0, 64], sizes = [6, 64], strides = [1, 1]} : vector<6x192xf32> to vector<6x64xf32>
    %cst_14 = arith.constant dense<0.000000e+00> : vector<6x64xf32>
    %37 = tpu.matmul %35, %36, %cst_14 {dimension_numbers = #tpu.dot_dimension_numbers<[1], [0], [0], [1], [0, 0, 1, 1], [], []>} : vector<6x6xf32>, vector<6x64xf32>, vector<6x64xf32> -> vector<6x64xf32>
    %38 = arith.addf %34, %37 : vector<6x64xf32>
    %39 = vector.extract_strided_slice %0 {offsets = [0, 46], sizes = [6, 6], strides = [1, 1]} : vector<6x130xf32> to vector<6x6xf32>
    %40 = vector.extract_strided_slice %31 {offsets = [0, 128], sizes = [6, 64], strides = [1, 1]} : vector<6x192xf32> to vector<6x64xf32>
    %cst_15 = arith.constant dense<0.000000e+00> : vector<6x64xf32>
    %41 = tpu.matmul %39, %40, %cst_15 {dimension_numbers = #tpu.dot_dimension_numbers<[1], [0], [0], [1], [0, 0, 1, 1], [], []>} : vector<6x6xf32>, vector<6x64xf32>, vector<6x64xf32> -> vector<6x64xf32>
    %42 = arith.addf %38, %41 : vector<6x64xf32>
    %43 = vector.extract_strided_slice %0 {offsets = [0, 3], sizes = [6, 1], strides = [1, 1]} : vector<6x130xf32> to vector<6x1xf32>
    %44 = vector.broadcast %43 : vector<6x1xf32> to vector<6x64xf32>
    %45 = arith.addf %42, %44 : vector<6x64xf32>
    %46 = vector.extract_strided_slice %0 {offsets = [0, 124], sizes = [6, 6], strides = [1, 1]} : vector<6x130xf32> to vector<6x6xf32>
    %47 = vector.extract_strided_slice %10 {offsets = [0, 64], sizes = [6, 64], strides = [1, 1]} : vector<6x192xf32> to vector<6x64xf32>
    %cst_16 = arith.constant dense<0.000000e+00> : vector<6x64xf32>
    %48 = tpu.matmul %46, %47, %cst_16 {dimension_numbers = #tpu.dot_dimension_numbers<[1], [0], [0], [1], [0, 0, 1, 1], [], []>} : vector<6x6xf32>, vector<6x64xf32>, vector<6x64xf32> -> vector<6x64xf32>
    %49 = vector.extract_strided_slice %0 {offsets = [0, 8], sizes = [6, 1], strides = [1, 1]} : vector<6x130xf32> to vector<6x1xf32>
    %50 = vector.broadcast %49 : vector<6x1xf32> to vector<6x64xf32>
    %51 = arith.addf %48, %50 : vector<6x64xf32>
    %52 = arith.addf %45, %51 : vector<6x64xf32>
    %cst_17 = arith.constant 0.000000e+00 : f32
    %53 = vector.broadcast %cst_17 : f32 to vector<6x64xf32>
    %54 = arith.cmpf oge, %52, %53 : vector<6x64xf32>
    %cst_18 = arith.constant 0.00999999977 : f32
    %55 = vector.broadcast %cst_18 : f32 to vector<6x64xf32>
    %56 = arith.mulf %55, %52 : vector<6x64xf32>
    %57 = arith.select %54, %52, %56 : vector<6x64xi1>, vector<6x64xf32>
    %c0_19 = arith.constant 0 : index
    %c192 = arith.constant 192 : index
    %58 = vector.load %arg2[%c0_19, %c192] : memref<64x448xf32, #tpu.memory_space<vmem>>, vector<64x64xf32>
    %cst_20 = arith.constant dense<0.000000e+00> : vector<6x64xf32>
    %59 = tpu.matmul %57, %58, %cst_20 {dimension_numbers = #tpu.dot_dimension_numbers<[1], [0], [0], [1], [0, 0, 1, 1], [], []>} : vector<6x64xf32>, vector<64x64xf32>, vector<6x64xf32> -> vector<6x64xf32>
    %60 = vector.extract_strided_slice %59 {offsets = [0, 0], sizes = [6, 32], strides = [1, 1]} : vector<6x64xf32> to vector<6x32xf32>
    %61 = vector.extract_strided_slice %59 {offsets = [0, 32], sizes = [6, 32], strides = [1, 1]} : vector<6x64xf32> to vector<6x32xf32>
    %62 = arith.maximumf %60, %61 : vector<6x32xf32>
    %c0_21 = arith.constant 0 : index
    %c256 = arith.constant 256 : index
    %63 = vector.load %arg2[%c0_21, %c256] : memref<64x448xf32, #tpu.memory_space<vmem>>, vector<32x96xf32>
    %cst_22 = arith.constant dense<0.000000e+00> : vector<6x96xf32>
    %64 = tpu.matmul %62, %63, %cst_22 {dimension_numbers = #tpu.dot_dimension_numbers<[1], [0], [0], [1], [0, 0, 1, 1], [], []>} : vector<6x32xf32>, vector<32x96xf32>, vector<6x96xf32> -> vector<6x96xf32>
    %65 = vector.extract_strided_slice %0 {offsets = [0, 52], sizes = [6, 6], strides = [1, 1]} : vector<6x130xf32> to vector<6x6xf32>
    %66 = vector.extract_strided_slice %64 {offsets = [0, 0], sizes = [6, 32], strides = [1, 1]} : vector<6x96xf32> to vector<6x32xf32>
    %cst_23 = arith.constant dense<0.000000e+00> : vector<6x32xf32>
    %67 = tpu.matmul %65, %66, %cst_23 {dimension_numbers = #tpu.dot_dimension_numbers<[1], [0], [0], [1], [0, 0, 1, 1], [], []>} : vector<6x6xf32>, vector<6x32xf32>, vector<6x32xf32> -> vector<6x32xf32>
    %68 = vector.extract_strided_slice %0 {offsets = [0, 58], sizes = [6, 6], strides = [1, 1]} : vector<6x130xf32> to vector<6x6xf32>
    %69 = vector.extract_strided_slice %64 {offsets = [0, 32], sizes = [6, 32], strides = [1, 1]} : vector<6x96xf32> to vector<6x32xf32>
    %cst_24 = arith.constant dense<0.000000e+00> : vector<6x32xf32>
    %70 = tpu.matmul %68, %69, %cst_24 {dimension_numbers = #tpu.dot_dimension_numbers<[1], [0], [0], [1], [0, 0, 1, 1], [], []>} : vector<6x6xf32>, vector<6x32xf32>, vector<6x32xf32> -> vector<6x32xf32>
    %71 = arith.addf %67, %70 : vector<6x32xf32>
    %72 = vector.extract_strided_slice %0 {offsets = [0, 64], sizes = [6, 6], strides = [1, 1]} : vector<6x130xf32> to vector<6x6xf32>
    %73 = vector.extract_strided_slice %64 {offsets = [0, 64], sizes = [6, 32], strides = [1, 1]} : vector<6x96xf32> to vector<6x32xf32>
    %cst_25 = arith.constant dense<0.000000e+00> : vector<6x32xf32>
    %74 = tpu.matmul %72, %73, %cst_25 {dimension_numbers = #tpu.dot_dimension_numbers<[1], [0], [0], [1], [0, 0, 1, 1], [], []>} : vector<6x6xf32>, vector<6x32xf32>, vector<6x32xf32> -> vector<6x32xf32>
    %75 = arith.addf %71, %74 : vector<6x32xf32>
    %76 = vector.extract_strided_slice %0 {offsets = [0, 4], sizes = [6, 1], strides = [1, 1]} : vector<6x130xf32> to vector<6x1xf32>
    %77 = vector.broadcast %76 : vector<6x1xf32> to vector<6x32xf32>
    %78 = arith.addf %75, %77 : vector<6x32xf32>
    %cst_26 = arith.constant 0.000000e+00 : f32
    %79 = vector.broadcast %cst_26 : f32 to vector<6x32xf32>
    %80 = arith.cmpf oge, %78, %79 : vector<6x32xf32>
    %cst_27 = arith.constant 0.00999999977 : f32
    %81 = vector.broadcast %cst_27 : f32 to vector<6x32xf32>
    %82 = arith.mulf %81, %78 : vector<6x32xf32>
    %83 = arith.select %80, %78, %82 : vector<6x32xi1>, vector<6x32xf32>
    %cst_28 = arith.constant dense<0.000000e+00> : vector<6x96xf32>
    %84 = tpu.matmul %83, %63, %cst_28 {dimension_numbers = #tpu.dot_dimension_numbers<[1], [0], [0], [1], [0, 0, 1, 1], [], []>} : vector<6x32xf32>, vector<32x96xf32>, vector<6x96xf32> -> vector<6x96xf32>
    %85 = vector.extract_strided_slice %0 {offsets = [0, 70], sizes = [6, 6], strides = [1, 1]} : vector<6x130xf32> to vector<6x6xf32>
    %86 = vector.extract_strided_slice %84 {offsets = [0, 0], sizes = [6, 32], strides = [1, 1]} : vector<6x96xf32> to vector<6x32xf32>
    %cst_29 = arith.constant dense<0.000000e+00> : vector<6x32xf32>
    %87 = tpu.matmul %85, %86, %cst_29 {dimension_numbers = #tpu.dot_dimension_numbers<[1], [0], [0], [1], [0, 0, 1, 1], [], []>} : vector<6x6xf32>, vector<6x32xf32>, vector<6x32xf32> -> vector<6x32xf32>
    %88 = vector.extract_strided_slice %0 {offsets = [0, 76], sizes = [6, 6], strides = [1, 1]} : vector<6x130xf32> to vector<6x6xf32>
    %89 = vector.extract_strided_slice %84 {offsets = [0, 32], sizes = [6, 32], strides = [1, 1]} : vector<6x96xf32> to vector<6x32xf32>
    %cst_30 = arith.constant dense<0.000000e+00> : vector<6x32xf32>
    %90 = tpu.matmul %88, %89, %cst_30 {dimension_numbers = #tpu.dot_dimension_numbers<[1], [0], [0], [1], [0, 0, 1, 1], [], []>} : vector<6x6xf32>, vector<6x32xf32>, vector<6x32xf32> -> vector<6x32xf32>
    %91 = arith.addf %87, %90 : vector<6x32xf32>
    %92 = vector.extract_strided_slice %0 {offsets = [0, 82], sizes = [6, 6], strides = [1, 1]} : vector<6x130xf32> to vector<6x6xf32>
    %93 = vector.extract_strided_slice %84 {offsets = [0, 64], sizes = [6, 32], strides = [1, 1]} : vector<6x96xf32> to vector<6x32xf32>
    %cst_31 = arith.constant dense<0.000000e+00> : vector<6x32xf32>
    %94 = tpu.matmul %92, %93, %cst_31 {dimension_numbers = #tpu.dot_dimension_numbers<[1], [0], [0], [1], [0, 0, 1, 1], [], []>} : vector<6x6xf32>, vector<6x32xf32>, vector<6x32xf32> -> vector<6x32xf32>
    %95 = arith.addf %91, %94 : vector<6x32xf32>
    %96 = vector.extract_strided_slice %0 {offsets = [0, 5], sizes = [6, 1], strides = [1, 1]} : vector<6x130xf32> to vector<6x1xf32>
    %97 = vector.broadcast %96 : vector<6x1xf32> to vector<6x32xf32>
    %98 = arith.addf %95, %97 : vector<6x32xf32>
    %99 = arith.addf %98, %62 : vector<6x32xf32>
    %cst_32 = arith.constant 0.000000e+00 : f32
    %100 = vector.broadcast %cst_32 : f32 to vector<6x32xf32>
    %101 = arith.cmpf oge, %99, %100 : vector<6x32xf32>
    %cst_33 = arith.constant 0.00999999977 : f32
    %102 = vector.broadcast %cst_33 : f32 to vector<6x32xf32>
    %103 = arith.mulf %102, %99 : vector<6x32xf32>
    %104 = arith.select %101, %99, %103 : vector<6x32xi1>, vector<6x32xf32>
    %c0_34 = arith.constant 0 : index
    %c352 = arith.constant 352 : index
    %105 = vector.load %arg2[%c0_34, %c352] : memref<64x448xf32, #tpu.memory_space<vmem>>, vector<32x32xf32>
    %cst_35 = arith.constant dense<0.000000e+00> : vector<6x32xf32>
    %106 = tpu.matmul %104, %105, %cst_35 {dimension_numbers = #tpu.dot_dimension_numbers<[1], [0], [0], [1], [0, 0, 1, 1], [], []>} : vector<6x32xf32>, vector<32x32xf32>, vector<6x32xf32> -> vector<6x32xf32>
    %107 = vector.extract_strided_slice %106 {offsets = [0, 0], sizes = [6, 16], strides = [1, 1]} : vector<6x32xf32> to vector<6x16xf32>
    %108 = vector.extract_strided_slice %106 {offsets = [0, 16], sizes = [6, 16], strides = [1, 1]} : vector<6x32xf32> to vector<6x16xf32>
    %109 = arith.maximumf %107, %108 : vector<6x16xf32>
    %c0_36 = arith.constant 0 : index
    %c384 = arith.constant 384 : index
    %110 = vector.load %arg2[%c0_36, %c384] : memref<64x448xf32, #tpu.memory_space<vmem>>, vector<16x48xf32>
    %cst_37 = arith.constant dense<0.000000e+00> : vector<6x48xf32>
    %111 = tpu.matmul %109, %110, %cst_37 {dimension_numbers = #tpu.dot_dimension_numbers<[1], [0], [0], [1], [0, 0, 1, 1], [], []>} : vector<6x16xf32>, vector<16x48xf32>, vector<6x48xf32> -> vector<6x48xf32>
    %112 = vector.extract_strided_slice %0 {offsets = [0, 88], sizes = [6, 6], strides = [1, 1]} : vector<6x130xf32> to vector<6x6xf32>
    %113 = vector.extract_strided_slice %111 {offsets = [0, 0], sizes = [6, 16], strides = [1, 1]} : vector<6x48xf32> to vector<6x16xf32>
    %cst_38 = arith.constant dense<0.000000e+00> : vector<6x16xf32>
    %114 = tpu.matmul %112, %113, %cst_38 {dimension_numbers = #tpu.dot_dimension_numbers<[1], [0], [0], [1], [0, 0, 1, 1], [], []>} : vector<6x6xf32>, vector<6x16xf32>, vector<6x16xf32> -> vector<6x16xf32>
    %115 = vector.extract_strided_slice %0 {offsets = [0, 94], sizes = [6, 6], strides = [1, 1]} : vector<6x130xf32> to vector<6x6xf32>
    %116 = vector.extract_strided_slice %111 {offsets = [0, 16], sizes = [6, 16], strides = [1, 1]} : vector<6x48xf32> to vector<6x16xf32>
    %cst_39 = arith.constant dense<0.000000e+00> : vector<6x16xf32>
    %117 = tpu.matmul %115, %116, %cst_39 {dimension_numbers = #tpu.dot_dimension_numbers<[1], [0], [0], [1], [0, 0, 1, 1], [], []>} : vector<6x6xf32>, vector<6x16xf32>, vector<6x16xf32> -> vector<6x16xf32>
    %118 = arith.addf %114, %117 : vector<6x16xf32>
    %119 = vector.extract_strided_slice %0 {offsets = [0, 100], sizes = [6, 6], strides = [1, 1]} : vector<6x130xf32> to vector<6x6xf32>
    %120 = vector.extract_strided_slice %111 {offsets = [0, 32], sizes = [6, 16], strides = [1, 1]} : vector<6x48xf32> to vector<6x16xf32>
    %cst_40 = arith.constant dense<0.000000e+00> : vector<6x16xf32>
    %121 = tpu.matmul %119, %120, %cst_40 {dimension_numbers = #tpu.dot_dimension_numbers<[1], [0], [0], [1], [0, 0, 1, 1], [], []>} : vector<6x6xf32>, vector<6x16xf32>, vector<6x16xf32> -> vector<6x16xf32>
    %122 = arith.addf %118, %121 : vector<6x16xf32>
    %123 = vector.extract_strided_slice %0 {offsets = [0, 6], sizes = [6, 1], strides = [1, 1]} : vector<6x130xf32> to vector<6x1xf32>
    %124 = vector.broadcast %123 : vector<6x1xf32> to vector<6x16xf32>
    %125 = arith.addf %122, %124 : vector<6x16xf32>
    %cst_41 = arith.constant 0.000000e+00 : f32
    %126 = vector.broadcast %cst_41 : f32 to vector<6x16xf32>
    %127 = arith.cmpf oge, %125, %126 : vector<6x16xf32>
    %cst_42 = arith.constant 0.00999999977 : f32
    %128 = vector.broadcast %cst_42 : f32 to vector<6x16xf32>
    %129 = arith.mulf %128, %125 : vector<6x16xf32>
    %130 = arith.select %127, %125, %129 : vector<6x16xi1>, vector<6x16xf32>
    %cst_43 = arith.constant dense<0.000000e+00> : vector<6x48xf32>
    %131 = tpu.matmul %130, %110, %cst_43 {dimension_numbers = #tpu.dot_dimension_numbers<[1], [0], [0], [1], [0, 0, 1, 1], [], []>} : vector<6x16xf32>, vector<16x48xf32>, vector<6x48xf32> -> vector<6x48xf32>
    %132 = vector.extract_strided_slice %0 {offsets = [0, 106], sizes = [6, 6], strides = [1, 1]} : vector<6x130xf32> to vector<6x6xf32>
    %133 = vector.extract_strided_slice %131 {offsets = [0, 0], sizes = [6, 16], strides = [1, 1]} : vector<6x48xf32> to vector<6x16xf32>
    %cst_44 = arith.constant dense<0.000000e+00> : vector<6x16xf32>
    %134 = tpu.matmul %132, %133, %cst_44 {dimension_numbers = #tpu.dot_dimension_numbers<[1], [0], [0], [1], [0, 0, 1, 1], [], []>} : vector<6x6xf32>, vector<6x16xf32>, vector<6x16xf32> -> vector<6x16xf32>
    %135 = vector.extract_strided_slice %0 {offsets = [0, 112], sizes = [6, 6], strides = [1, 1]} : vector<6x130xf32> to vector<6x6xf32>
    %136 = vector.extract_strided_slice %131 {offsets = [0, 16], sizes = [6, 16], strides = [1, 1]} : vector<6x48xf32> to vector<6x16xf32>
    %cst_45 = arith.constant dense<0.000000e+00> : vector<6x16xf32>
    %137 = tpu.matmul %135, %136, %cst_45 {dimension_numbers = #tpu.dot_dimension_numbers<[1], [0], [0], [1], [0, 0, 1, 1], [], []>} : vector<6x6xf32>, vector<6x16xf32>, vector<6x16xf32> -> vector<6x16xf32>
    %138 = arith.addf %134, %137 : vector<6x16xf32>
    %139 = vector.extract_strided_slice %0 {offsets = [0, 118], sizes = [6, 6], strides = [1, 1]} : vector<6x130xf32> to vector<6x6xf32>
    %140 = vector.extract_strided_slice %131 {offsets = [0, 32], sizes = [6, 16], strides = [1, 1]} : vector<6x48xf32> to vector<6x16xf32>
    %cst_46 = arith.constant dense<0.000000e+00> : vector<6x16xf32>
    %141 = tpu.matmul %139, %140, %cst_46 {dimension_numbers = #tpu.dot_dimension_numbers<[1], [0], [0], [1], [0, 0, 1, 1], [], []>} : vector<6x6xf32>, vector<6x16xf32>, vector<6x16xf32> -> vector<6x16xf32>
    %142 = arith.addf %138, %141 : vector<6x16xf32>
    %143 = vector.extract_strided_slice %0 {offsets = [0, 7], sizes = [6, 1], strides = [1, 1]} : vector<6x130xf32> to vector<6x1xf32>
    %144 = vector.broadcast %143 : vector<6x1xf32> to vector<6x16xf32>
    %145 = arith.addf %142, %144 : vector<6x16xf32>
    %146 = arith.addf %145, %109 : vector<6x16xf32>
    %cst_47 = arith.constant 0.000000e+00 : f32
    %147 = vector.broadcast %cst_47 : f32 to vector<6x16xf32>
    %148 = arith.cmpf oge, %146, %147 : vector<6x16xf32>
    %cst_48 = arith.constant 0.00999999977 : f32
    %149 = vector.broadcast %cst_48 : f32 to vector<6x16xf32>
    %150 = arith.mulf %149, %146 : vector<6x16xf32>
    %151 = arith.select %148, %146, %150 : vector<6x16xi1>, vector<6x16xf32>
    %c0_49 = arith.constant 0 : index
    %c432 = arith.constant 432 : index
    %152 = vector.load %arg2[%c0_49, %c432] : memref<64x448xf32, #tpu.memory_space<vmem>>, vector<16x16xf32>
    %cst_50 = arith.constant dense<0.000000e+00> : vector<6x16xf32>
    %153 = tpu.matmul %151, %152, %cst_50 {dimension_numbers = #tpu.dot_dimension_numbers<[1], [0], [0], [1], [0, 0, 1, 1], [], []>} : vector<6x16xf32>, vector<16x16xf32>, vector<6x16xf32> -> vector<6x16xf32>
    %154 = vector.extract_strided_slice %153 {offsets = [0, 0], sizes = [6, 8], strides = [1, 1]} : vector<6x16xf32> to vector<6x8xf32>
    %155 = vector.extract_strided_slice %153 {offsets = [0, 8], sizes = [6, 8], strides = [1, 1]} : vector<6x16xf32> to vector<6x8xf32>
    %156 = arith.maximumf %154, %155 : vector<6x8xf32>
    %c0_51 = arith.constant 0 : index
    %c0_52 = arith.constant 0 : index
    %157 = vector.load %arg4[%c0_51, %c0_52] : memref<16x27xf32, #tpu.memory_space<vmem>>, vector<16x27xf32>
    %158 = vector.extract_strided_slice %157 {offsets = [0, 24], sizes = [16, 1], strides = [1, 1]} : vector<16x27xf32> to vector<16x1xf32>
    %159 = vector.extract_strided_slice %157 {offsets = [0, 0], sizes = [16, 6], strides = [1, 1]} : vector<16x27xf32> to vector<16x6xf32>
    %160 = vector.extract_strided_slice %156 {offsets = [0, 0], sizes = [6, 2], strides = [1, 1]} : vector<6x8xf32> to vector<6x2xf32>
    %cst_53 = arith.constant dense<0.000000e+00> : vector<16x2xf32>
    %161 = tpu.matmul %159, %160, %cst_53 {dimension_numbers = #tpu.dot_dimension_numbers<[1], [0], [0], [1], [0, 0, 1, 1], [], []>} : vector<16x6xf32>, vector<6x2xf32>, vector<16x2xf32> -> vector<16x2xf32>
    %162 = vector.broadcast %158 : vector<16x1xf32> to vector<16x2xf32>
    %163 = arith.addf %162, %161 : vector<16x2xf32>
    %164 = vector.extract_strided_slice %157 {offsets = [0, 6], sizes = [16, 6], strides = [1, 1]} : vector<16x27xf32> to vector<16x6xf32>
    %165 = vector.extract_strided_slice %156 {offsets = [0, 2], sizes = [6, 2], strides = [1, 1]} : vector<6x8xf32> to vector<6x2xf32>
    %cst_54 = arith.constant dense<0.000000e+00> : vector<16x2xf32>
    %166 = tpu.matmul %164, %165, %cst_54 {dimension_numbers = #tpu.dot_dimension_numbers<[1], [0], [0], [1], [0, 0, 1, 1], [], []>} : vector<16x6xf32>, vector<6x2xf32>, vector<16x2xf32> -> vector<16x2xf32>
    %167 = arith.addf %163, %166 : vector<16x2xf32>
    %168 = vector.extract_strided_slice %157 {offsets = [0, 12], sizes = [16, 6], strides = [1, 1]} : vector<16x27xf32> to vector<16x6xf32>
    %169 = vector.extract_strided_slice %156 {offsets = [0, 4], sizes = [6, 2], strides = [1, 1]} : vector<6x8xf32> to vector<6x2xf32>
    %cst_55 = arith.constant dense<0.000000e+00> : vector<16x2xf32>
    %170 = tpu.matmul %168, %169, %cst_55 {dimension_numbers = #tpu.dot_dimension_numbers<[1], [0], [0], [1], [0, 0, 1, 1], [], []>} : vector<16x6xf32>, vector<6x2xf32>, vector<16x2xf32> -> vector<16x2xf32>
    %171 = arith.addf %167, %170 : vector<16x2xf32>
    %172 = vector.extract_strided_slice %157 {offsets = [0, 18], sizes = [16, 6], strides = [1, 1]} : vector<16x27xf32> to vector<16x6xf32>
    %173 = vector.extract_strided_slice %156 {offsets = [0, 6], sizes = [6, 2], strides = [1, 1]} : vector<6x8xf32> to vector<6x2xf32>
    %cst_56 = arith.constant dense<0.000000e+00> : vector<16x2xf32>
    %174 = tpu.matmul %172, %173, %cst_56 {dimension_numbers = #tpu.dot_dimension_numbers<[1], [0], [0], [1], [0, 0, 1, 1], [], []>} : vector<16x6xf32>, vector<6x2xf32>, vector<16x2xf32> -> vector<16x2xf32>
    %175 = arith.addf %171, %174 : vector<16x2xf32>
    %cst_57 = arith.constant 0.000000e+00 : f32
    %176 = vector.broadcast %cst_57 : f32 to vector<16x2xf32>
    %177 = arith.cmpf oge, %175, %176 : vector<16x2xf32>
    %cst_58 = arith.constant 0.00999999977 : f32
    %178 = vector.broadcast %cst_58 : f32 to vector<16x2xf32>
    %179 = arith.mulf %178, %175 : vector<16x2xf32>
    %180 = arith.select %177, %175, %179 : vector<16x2xi1>, vector<16x2xf32>
    %181 = vector.extract_strided_slice %157 {offsets = [0, 25], sizes = [16, 1], strides = [1, 1]} : vector<16x27xf32> to vector<16x1xf32>
    %182 = vector.extract_strided_slice %157 {offsets = [0, 26], sizes = [1, 1], strides = [1, 1]} : vector<16x27xf32> to vector<1x1xf32>
    %183 = vector.broadcast %181 : vector<16x1xf32> to vector<16x2xf32>
    %184 = arith.mulf %180, %183 : vector<16x2xf32>
    %cst_59 = arith.constant dense<0.000000e+00> : vector<2xf32>
    %185 = vector.multi_reduction <add>, %184, %cst_59 [0] : vector<16x2xf32> to vector<2xf32>
    %186 = vector.shape_cast %185 : vector<2xf32> to vector<1x2xf32>
    %187 = vector.broadcast %182 : vector<1x1xf32> to vector<1x2xf32>
    %188 = arith.addf %186, %187 : vector<1x2xf32>
    %cst_60 = arith.constant 0.000000e+00 : f32
    %189 = vector.broadcast %cst_60 : f32 to vector<1x2xf32>
    %190 = arith.subf %189, %188 : vector<1x2xf32>
    %191 = math.exp %190 : vector<1x2xf32>
    %cst_61 = arith.constant 1.000000e+00 : f32
    %192 = vector.broadcast %cst_61 : f32 to vector<1x2xf32>
    %193 = arith.addf %192, %191 : vector<1x2xf32>
    %194 = tpu.reciprocal %193 {approx = true} : vector<1x2xf32> -> vector<1x2xf32>
    %c0_62 = arith.constant 0 : index
    %c0_63 = arith.constant 0 : index
    %195 = vector.load %arg5[%c0_62, %c0_63] : memref<1x2xf32, #tpu.memory_space<vmem>>, vector<1x2xf32>
    tpu.vector_store %arg5[%c0_62, %c0_63], %194 {strides = array<i32>} : memref<1x2xf32, #tpu.memory_space<vmem>>, vector<1x2xf32>,
    return
  }
}

</mosaic_0001>

<bundles_post_ra>
// kernel: tpu_custom_call.1
= control target key start
LH: loop header
LB: loop body
LE: loop exit
PB: predicated region body
PF: predicated region fallthrough
CT: control target
= control target key end

     0   :  { %v3231_v3 = vmov 0   ;;  %v3232_v10 = vmov 1   ;;  %s3837_s0 = inlined_call_operand.vmem [shape: f32[1,256], index: 0, kind: input, shape index: {}]   ;;  %s3838_s1 = inlined_call_operand.vmem [shape: f32[256,192], index: 1, kind: input, shape index: {}]   ;;  %s3839_s2 = inlined_call_operand.vmem [shape: f32[64,448], index: 2, kind: input, shape index: {}]   ;;  %s3840_s3 = inlined_call_operand.vmem [shape: f32[6,130], index: 3, kind: input, shape index: {}]   ;;  %s3841_s4 = inlined_call_operand.vmem [shape: f32[16,27], index: 4, kind: input, shape index: {}]   ;;  %s3842_s5 = inlined_call_operand.hbm [shape: f32[1,2], index: 5, kind: output, shape index: {}]  }
   0x1   :  { %v3307_v0 = vld [vmem:[%s3840_s3] sm:$0x3f]  ;;  %v79_v1 = vld [vmem:[%s3838_s1 + $0xf8] sm:$0xff]  ;;  %v78_v2 = vld [vmem:[%s3838_s1 + $0xf0] sm:$0xff]  ;;  %3189 = vset.pattern.permute.xlu0 %v3231_v3 }
   0x2   :  { %112 = vmatprep.subr.mxu0 %v79_v1  ;;  %v77_v4 = vld [vmem:[%s3838_s1 + $0xe8] sm:$0xff]  ;;  %v76_v5 = vld [vmem:[%s3838_s1 + $0xe0] sm:$0xff]  ;;  %26 = vperm.xlu0 %3189, %v3307_v0   ;;  %v75_v6 = vld [vmem:[%s3838_s1 + $0xd8] sm:$0xff] }
   0x3   :  { %113 = vmatpush1.msra.mxu0 %v78_v2  ;;  %v74_v7 = vld [vmem:[%s3838_s1 + $0xd0] sm:$0xff]  ;;  %v73_v8 = vld [vmem:[%s3838_s1 + $0xc8] sm:$0xff]  ;;  %v72_v9 = vld [vmem:[%s3838_s1 + $0xc0] sm:$0xff] }
   0x4   :  { %114 = vmatprep.subr.mxu0 %v77_v4  ;;  %v71_v11 = vld [vmem:[%s3838_s1 + $0xb8] sm:$0xff]  ;;  %v70_v12 = vld [vmem:[%s3838_s1 + $0xb0] sm:$0xff]  ;;  %v69_v13 = vld [vmem:[%s3838_s1 + $0xa8] sm:$0xff] }
   0x5   :  { %115 = vmatpush1.msra.mxu0 %v76_v5  ;;  %v68_v14 = vld [vmem:[%s3838_s1 + $0xa0] sm:$0xff]  ;;  %v67_v15 = vld [vmem:[%s3838_s1 + $0x98] sm:$0xff]  ;;  %v66_v16 = vld [vmem:[%s3838_s1 + $0x90] sm:$0xff] }
   0x6   :  { %116 = vmatprep.subr.mxu0 %v75_v6  ;;  %3190 = vset.pattern.permute.xlu0 %v3232_v10  ;;  %v65_v17 = vld [vmem:[%s3838_s1 + $0x88] sm:$0xff]  ;;  %v64_v18 = vld [vmem:[%s3838_s1 + $0x80] sm:$0xff]  ;;  %v63_v19 = vld [vmem:[%s3838_s1 + $0x78] sm:$0xff] }
   0x7   :  { %117 = vmatpush1.msra.mxu0 %v74_v7  ;;  %43 = vperm.xlu0 %3190, %v3307_v0   ;;  %v62_v20 = vld [vmem:[%s3838_s1 + $0x70] sm:$0xff]  ;;  %v61_v21 = vld [vmem:[%s3838_s1 + $0x68] sm:$0xff]  ;;  %v60_v22 = vld [vmem:[%s3838_s1 + $0x60] sm:$0xff] }
   0x8   :  { %118 = vmatprep.subr.mxu0 %v73_v8  ;;  %v59_v23 = vld [vmem:[%s3838_s1 + $0x58] sm:$0xff]  ;;  %v58_v24 = vld [vmem:[%s3838_s1 + $0x50] sm:$0xff]  ;;  %v57_v25 = vld [vmem:[%s3838_s1 + $0x48] sm:$0xff] }
   0x9   :  { %119 = vmatpush1.msra.mxu0 %v72_v9  ;;  %v56_v26 = vld [vmem:[%s3838_s1 + $0x40] sm:$0xff]  ;;  %v55_v27 = vld [vmem:[%s3838_s1 + $0x38] sm:$0xff] }
   0xa   :  { %120 = vmatprep.subr.mxu0 %v71_v11 }
   0xb   :  { %121 = vmatpush1.msra.mxu0 %v70_v12 }
   0xc   :  { %122 = vmatprep.subr.mxu0 %v69_v13 }
   0xd   :  { %123 = vmatpush1.msra.mxu0 %v68_v14 }
   0xe   :  { %124 = vmatprep.subr.mxu0 %v67_v15 }
   0xf   :  { %125 = vmatpush1.msra.mxu0 %v66_v16 }
  0x10   :  { %126 = vmatprep.subr.mxu0 %v65_v17 }
  0x11   :  { %127 = vmatpush1.msra.mxu0 %v64_v18 }
  0x12   :  { %128 = vmatprep.subr.mxu0 %v63_v19 }
  0x13   :  { %129 = vmatpush1.msra.mxu0 %v62_v20 }
  0x14   :  { %130 = vmatprep.subr.mxu0 %v61_v21 }
  0x15   :  { %131 = vmatpush1.msra.mxu0 %v60_v22 }
  0x16   :  { %132 = vmatprep.subr.mxu0 %v59_v23 }
  0x17   :  { %133 = vmatpush1.msra.mxu0 %v58_v24 }
  0x18   :  { %10 = vsyncpa [#allocation3], 0  ;;  %134 = vmatprep.subr.mxu0 %v57_v25  ;;  %v54_v28 = vld [vmem:[%s3838_s1 + $0x30] sm:$0xff]  ;;  %v53_v29 = vld [vmem:[%s3838_s1 + $0x28] sm:$0xff]  ;;  %v30_v4 = vlaneseq  ;;  %v3234_v17 = vmov 0.0   ;;  %vm3235_vm0 = vmmov 0  }
  0x19   :  { %135 = vmatpush1.msra.mxu0 %v56_v26  ;;  %v52_v30 = vld [vmem:[%s3838_s1 + $0x20] sm:$0xff]  ;;  %v51_v31 = vld [vmem:[%s3838_s1 + $0x18] sm:$0xff]  ;;  %v50_v32 = vld [vmem:[%s3838_s1 + $0x10] sm:$0xff]  ;;  %2958 = vmatprep.subr.mxu1 %v3234_v17  ;;  %v3237_v19 = vmov 2   ;;  %s3238_s25 = smov 106   ;;  %s3239_s26 = smov 112  }
  0x1a   :  { %136 = vmatprep.subr.mxu0 %v55_v27  ;;  %v49_v33 = vld [vmem:[%s3838_s1 + $0x8] sm:$0xff]  ;;  %v48_v34 = vld [vmem:[%s3838_s1] sm:$0xff]  ;;  %v111_v35 = vld [vmem:[%s3838_s1 + $0x1f8] sm:$0xff]  ;;  %v31_v5 = vshrl.u32 %v30_v4, 7  ;;  %2960 = vmatprep.mubr.msk.f32.mxu1 %vm3235_vm0, %v3234_v17  ;;  %vm191_vm1 = vcmask 1045504   ;;  %vm188_vm2 = vcmask 48128  }
  0x1b   :  { %137 = vmatpush1.msra.mxu0 %v54_v28  ;;  %v110_v36 = vld [vmem:[%s3838_s1 + $0x1f0] sm:$0xff]  ;;  %v109_v37 = vld [vmem:[%s3838_s1 + $0x1e8] sm:$0xff]  ;;  %v108_v38 = vld [vmem:[%s3838_s1 + $0x1e0] sm:$0xff]  ;;  %3191 = vset.pattern.permute.xlu1 %v3237_v19  ;;  %vm442_vm4 = vcmask 523264   ;;  %s3240_s9 = smov 88   ;;  %s3241_s10 = smov 82  }
  0x1c   :  { %138 = vmatprep.subr.mxu0 %v53_v29  ;;  %v107_v39 = vld [vmem:[%s3838_s1 + $0x1d8] sm:$0xff]  ;;  %v106_v40 = vld [vmem:[%s3838_s1 + $0x1d0] sm:$0xff]  ;;  %v105_v41 = vld [vmem:[%s3838_s1 + $0x1c8] sm:$0xff]  ;;  %v32_v6 = vsub.s32 0, %v31_v5  ;;  %v36_v7 = vsub.s32 1, %v31_v5  ;;  %s3242_s13 = smov 4  }
  0x1d   :  { %139 = vmatpush1.msra.mxu0 %v52_v30  ;;  %v104_v42 = vld [vmem:[%s3838_s1 + $0x1c0] sm:$0xff]  ;;  %v103_v43 = vld [vmem:[%s3838_s1 + $0x1b8] sm:$0xff]  ;;  %v102_v44 = vld [vmem:[%s3838_s1 + $0x1b0] sm:$0xff]  ;;  %s3245_s14 = smov 94   ;;  %vm764_vm5 = vcmask 31744   ;;  %s3246_s23 = smov 96  }
  0x1e   :  { %140 = vmatprep.subr.mxu0 %v51_v31  ;;  %v101_v45 = vld [vmem:[%s3838_s1 + $0x1a8] sm:$0xff]  ;;  %v100_v46 = vld [vmem:[%s3838_s1 + $0x1a0] sm:$0xff]  ;;  %v99_v47 = vld [vmem:[%s3838_s1 + $0x198] sm:$0xff]  ;;  %s3247_s24 = smov 70   ;;  %vm956_vm7 = vcmask 261120   ;;  %s3252_s27 = smov 58  }
  0x1f   :  { %141 = vmatpush1.msra.mxu0 %v50_v32  ;;  %v98_v48 = vld [vmem:[%s3838_s1 + $0x190] sm:$0xff]  ;;  %v97_v49 = vld [vmem:[%s3838_s1 + $0x188] sm:$0xff]  ;;  %v96_v50 = vld [vmem:[%s3838_s1 + $0x180] sm:$0xff]  ;;  %s3253_s28 = smov 46   ;;  %s3254_s29 = smov 32   ;;  %vm1684_vm10 = vcmask 130048  }
  0x20   :  { %142 = vmatprep.subr.mxu0 %v49_v33  ;;  %v95_v51 = vld [vmem:[%s3838_s1 + $0x178] sm:$0xff]  ;;  %v94_v52 = vld [vmem:[%s3838_s1 + $0x170] sm:$0xff]  ;;  %v93_v53 = vld [vmem:[%s3838_s1 + $0x168] sm:$0xff]  ;;  %s3255_s8 = smov 34   ;;  %s3259_s12 = smov 16   ;;  %vm2781_vm15 = vcmask 15360  }
  0x21   :  { %143 = vmatpush1.msra.mxu0 %v48_v34  ;;  %v92_v54 = vld [vmem:[%s3838_s1 + $0x160] sm:$0xff]  ;;  %v91_v55 = vld [vmem:[%s3838_s1 + $0x158] sm:$0xff]  ;;  %v90_v56 = vld [vmem:[%s3838_s1 + $0x150] sm:$0xff]  ;;  %s3264_s18 = smov 122   ;;  %s3265_s19 = smov 116  }
  0x22   :  { %144 = vmatprep.subr.mxu0 %v111_v35  ;;  %v89_v57 = vld [vmem:[%s3838_s1 + $0x148] sm:$0xff]  ;;  %v88_v58 = vld [vmem:[%s3838_s1 + $0x140] sm:$0xff]  ;;  %v87_v59 = vld [vmem:[%s3838_s1 + $0x138] sm:$0xff]  ;;  %s3266_s20 = smov 120   ;;  %s3268_s21 = smov 124  }
  0x23   :  { %145 = vmatpush2.msra.mxu0 %v110_v36  ;;  %v86_v60 = vld [vmem:[%s3838_s1 + $0x130] sm:$0xff]  ;;  %v85_v61 = vld [vmem:[%s3838_s1 + $0x128] sm:$0xff]  ;;  %v84_v62 = vld [vmem:[%s3838_s1 + $0x120] sm:$0xff]  ;;  %s3270_s22 = smov 110  }
  0x24   :  { %146 = vmatprep.subr.mxu0 %v109_v37  ;;  %v83_v63 = vld [vmem:[%s3838_s1 + $0x118] sm:$0xff]  ;;  %v82_v1 = vld [vmem:[%s3838_s1 + $0x110] sm:$0xff]  ;;  %v81_v2 = vld [vmem:[%s3838_s1 + $0x108] sm:$0xff] }
  0x25   :  { %147 = vmatpush2.msra.mxu0 %v108_v38  ;;  %v80_v3 = vld [vmem:[%s3838_s1 + $0x100] sm:$0xff]  ;;  %s3233_s1 = smov 100   ;;  %v3537_v25 = vld [vmem:[%s3839_s2 + $0xe8] sm:$0xff] }
  0x26   :  { %148 = vmatprep.subr.mxu0 %v107_v39  ;;  %v23_v8 = vld [vmem:[%s3837_s0] sm:$0x3]  ;;  %340 = vrot.lane.b32.xlu0 %v3307_v0, %s3233_s1  ;;  %s3236_s0 = smov 64   ;;  %v439_v27 = vld [vmem:[%s3839_s2 + $0xc8] sm:$0xff]  ;;  %s3249_s1 = smov 76  }
  0x27   :  { %149 = vmatpush2.msra.mxu0 %v106_v40  ;;  %v33_v9 = vrot.slane %v23_v8, %v32_v6  ;;  %v37_v10 = vrot.slane %v23_v8, %v36_v7  ;;  %v440_v26 = vld [vmem:[%s3839_s2 + $0xe0] sm:$0xff]  ;;  %v437_v29 = vld [vmem:[%s3839_s2 + $0xa8] sm:$0xff] }
  0x28   :  { %150 = vmatprep.subr.mxu0 %v105_v41  ;;  %v438_v28 = vld [vmem:[%s3839_s2 + $0xc0] sm:$0xff]  ;;  %v435_v31 = vld [vmem:[%s3839_s2 + $0x88] sm:$0xff] }
  0x29   :  { %151 = vmatpush2.msra.mxu0 %v104_v42  ;;  %v436_v30 = vld [vmem:[%s3839_s2 + $0xa0] sm:$0xff]  ;;  %v433_v33 = vld [vmem:[%s3839_s2 + $0x68] sm:$0xff] }
  0x2a   :  { %152 = vmatprep.subr.mxu0 %v103_v43  ;;  %v434_v32 = vld [vmem:[%s3839_s2 + $0x80] sm:$0xff]  ;;  %v431_v35 = vld [vmem:[%s3839_s2 + $0x48] sm:$0xff] }
  0x2b   :  { %153 = vmatpush2.msra.mxu0 %v102_v44  ;;  %v432_v34 = vld [vmem:[%s3839_s2 + $0x60] sm:$0xff]  ;;  %v429_v37 = vld [vmem:[%s3839_s2 + $0x28] sm:$0xff] }
  0x2c   :  { %154 = vmatprep.subr.mxu0 %v101_v45  ;;  %v430_v36 = vld [vmem:[%s3839_s2 + $0x40] sm:$0xff]  ;;  %v427_v39 = vld [vmem:[%s3839_s2 + $0x8] sm:$0xff] }
  0x2d   :  { %155 = vmatpush2.msra.mxu0 %v100_v46  ;;  %v428_v38 = vld [vmem:[%s3839_s2 + $0x20] sm:$0xff] }
  0x2e   :  { %156 = vmatprep.subr.mxu0 %v99_v47  ;;  %v426_v40 = vld [vmem:[%s3839_s2] sm:$0xff] }
  0x2f   :  { %157 = vmatpush2.msra.mxu0 %v98_v48 }
  0x30   :  { %158 = vmatprep.subr.mxu0 %v97_v49 }
  0x31   :  { %159 = vmatpush2.msra.mxu0 %v96_v50 }
  0x32   :  { %160 = vmatprep.subr.mxu0 %v95_v51 }
  0x33   :  { %161 = vmatpush2.msra.mxu0 %v94_v52 }
  0x34   :  { %162 = vmatprep.subr.mxu0 %v93_v53  ;;  %v22_v53 = vld [vmem:[%s3840_s3 + $0x8] sm:$0x3f] }
  0x35   :  { %163 = vmatpush2.msra.mxu0 %v92_v54 }
  0x36   :  { %164 = vmatprep.subr.mxu0 %v91_v55  ;;  %v3243_v55 = vmov 8  }
  0x37   :  { %165 = vmatpush2.msra.mxu0 %v90_v56  ;;  %v3244_v56 = vmov 3  }
  0x38   :  { %166 = vmatprep.subr.mxu0 %v89_v57  ;;  %3192 = vset.pattern.permute.xlu0 %v3244_v56  ;;  %v3251_v56 = vmov 5  }
  0x39   :  { %167 = vmatpush2.msra.mxu0 %v88_v58 }
  0x3a   :  { %168 = vmatprep.subr.mxu0 %v87_v59 }
  0x3b   :  { %169 = vmatpush2.msra.mxu0 %v86_v60 }
  0x3c   :  { %170 = vmatprep.subr.mxu0 %v85_v61 }
  0x3d   :  { %171 = vmatpush2.msra.mxu0 %v84_v62 }
  0x3e   :  { %172 = vmatprep.subr.mxu0 %v83_v63 }
  0x3f   :  { %173 = vmatpush2.msra.mxu0 %v82_v1 }
  0x40   :  { %174 = vmatprep.subr.mxu0 %v81_v2 }
  0x41   :  { %175 = vmatpush2.msra.mxu0 %v80_v3 }
  0x42   :  { %3023 = vmatprep.subr.mxu0 %v3234_v17 }
  0x7d   :  { %v27_v11 = vpop.permute.xlu0 %26 }
  0x7e   :  { %v40_v12 = vmul.f32 %v33_v9, %v27_v11  ;;  %v41_v13 = vmul.f32 %v37_v10, %v27_v11 }
  0x82   :  { %v44_v14 = vpop.permute.xlu0 %43 }
  0x83   :  { %v46_v15 = vadd.f32 %v44_v14, %v40_v12  ;;  %v47_v16 = vadd.f32 %v44_v14, %v41_v13 }
  0x85   :  { %176 = vmatprep.mubr.f32.mxu0 %v47_v16 }
  0x86   :  { %177 = vmatmul.mubr.f32.vlgmr.msra.gmra.mxu0 %v46_v15 }
  0x87   :  { %3025 = vmatprep.mubr.msk.f32.mxu0 %vm3235_vm0, %v3234_v17 }
  0x98   :  { %v341_v24 = vpop.permute.xlu0 %340 }
 0x146   :  { %v178_v18 = vpop.f32.mrf.mxu0 }
 0x147   :  { %186 = vrot.lane.b32.xlu1 %v178_v18, %s3236_s0 }
 0x148   :  { %v180_v23 = vpop.f32.mrf.mxu0 }
 0x14b   :  { %183 = vrot.lane.b32.xlu1 %v3307_v0, %s3238_s25  ;;  %s3250_s25 = smov 52  }
 0x14f   :  { %264 = vrot.lane.b32.xlu1 %v3307_v0, %s3239_s26 }
 0x153   :  { %419 = vperm.xlu1 %3191, %v3307_v0  }
 0x157   :  { %517 = vrot.lane.b32.xlu1 %v3307_v0, %s3240_s9  ;;  %s3258_s9 = smov 28  }
 0x158   :  { %3193 = vset.pattern.permute.xlu1 %v3243_v55 }
 0x15b   :  { %672 = vrot.lane.b32.xlu1 %v3307_v0, %s3241_s10 }
 0x15f   :  { %762 = vrot.lane.b32.xlu1 %v22_v53, %s3242_s13 }
 0x163   :  { %862 = vrot.lane.b32.xlu1 %v439_v27, %s3236_s0 }
 0x167   :  { %756 = vperm.xlu1 %3193, %v3307_v0  }
 0x16b   :  { %860 = vrot.lane.b32.xlu1 %v437_v29, %s3236_s0 }
 0x16f   :  { %856 = vrot.lane.b32.xlu1 %v433_v33, %s3236_s0 }
 0x173   :  { %852 = vrot.lane.b32.xlu1 %v429_v37, %s3236_s0 }
 0x1b9   :  { %v3518_v20 = vpop.permute.xlu1 %186 }
 0x1ba   :  { %2959 = vmatpush3.msk.msra.mxu1 %vm191_vm1, %v3518_v20 }
 0x1bb   :  { %2963 = vmatprep.subr.mxu1 %v3234_v17 }
 0x1bd   :  { %v184_v21 = vpop.permute.xlu1 %183 }
 0x1be   :  { %2961 = vmatmul.mubr.msk.f32.vlgmr.msra.gmra.mxu1 %vm188_vm2, %v184_v21 }
 0x1bf   :  { %2964 = vmatpush3.msk.msra.mxu1 %vm191_vm1, %v178_v18  ;;  %2965 = vmatprep.mubr.msk.f32.mxu1 %vm3235_vm0, %v3234_v17 }
 0x1c0   :  { %2968 = vmatprep.subr.mxu1 %v3234_v17 }
 0x1c1   :  { %v265_v22 = vpop.permute.xlu1 %264 }
 0x1c2   :  { %2966 = vmatmul.mubr.msk.f32.vlgmr.msra.gmra.mxu1 %vm188_vm2, %v265_v22 }
 0x1c3   :  { %2969 = vmatpush3.msk.msra.mxu1 %vm191_vm1, %v180_v23  ;;  %2970 = vmatprep.mubr.msk.f32.mxu1 %vm3235_vm0, %v3234_v17 }
 0x1c4   :  { %462 = vmatprep.subr.mxu1 %v3537_v25 }
 0x1c6   :  { %2971 = vmatmul.mubr.msk.f32.vlgmr.msra.gmra.mxu1 %vm188_vm2, %v341_v24 }
 0x1c7   :  { %510 = vmatprep.mubr.f32.mxu1 %v3234_v17  ;;  %463 = vmatpush1.msra.mxu1 %v440_v26 }
 0x1c8   :  { %464 = vmatprep.subr.mxu1 %v439_v27 }
 0x1c9   :  { %465 = vmatpush1.msra.mxu1 %v438_v28  ;;  %v3643_v28 = vld [vmem:[%s3839_s2 + $0x70] sm:$0xff] }
 0x1ca   :  { %466 = vmatprep.subr.mxu1 %v437_v29  ;;  %v3648_v29 = vld [vmem:[%s3839_s2 + $0x50] sm:$0xff] }
 0x1cb   :  { %467 = vmatpush1.msra.mxu1 %v436_v30  ;;  %v3655_v30 = vld [vmem:[%s3839_s2 + $0x30] sm:$0xff] }
 0x1cc   :  { %468 = vmatprep.subr.mxu1 %v435_v31 }
 0x1cd   :  { %469 = vmatpush1.msra.mxu1 %v434_v32 }
 0x1ce   :  { %470 = vmatprep.subr.mxu1 %v433_v33  ;;  %v420_v47 = vpop.permute.xlu1 %419 }
 0x1cf   :  { %471 = vmatpush1.msra.mxu1 %v432_v34 }
 0x1d0   :  { %472 = vmatprep.subr.mxu1 %v431_v35 }
 0x1d1   :  { %473 = vmatpush1.msra.mxu1 %v430_v36  ;;  %v3248_v36 = vmov 4  }
 0x1d2   :  { %474 = vmatprep.subr.mxu1 %v429_v37  ;;  %v518_v57 = vpop.permute.xlu1 %517  ;;  %3194 = vset.pattern.permute.xlu1 %v3248_v36 }
 0x1d3   :  { %475 = vmatpush1.msra.mxu1 %v428_v38 }
 0x1d4   :  { %476 = vmatprep.subr.mxu1 %v427_v39 }
 0x1d5   :  { %477 = vmatpush1.msra.mxu1 %v426_v40 }
 0x1d6   :  { %2973 = vmatprep.subr.mxu1 %v3234_v17  ;;  %v673_v59 = vpop.permute.xlu1 %672 }
 0x1da   :  { %v763_v62 = vpop.permute.xlu1 %762 }
 0x1de   :  { %v863_v3 = vpop.permute.xlu1 %862 }
 0x1e2   :  { %v757_v4 = vpop.permute.xlu1 %756 }
 0x1e6   :  { %v861_v6 = vpop.permute.xlu1 %860 }
 0x1ea   :  { %v857_v8 = vpop.permute.xlu1 %856 }
 0x1ee   :  { %v853_v10 = vpop.permute.xlu1 %852 }
 0x27e   :  { %v260_v41 = vpop.f32.mrf.mxu1 }
 0x280   :  { %v2962_v42 = vpop.f32.mrf.mxu1 }
 0x282   :  { %v336_v43 = vpop.f32.mrf.mxu1 }
 0x283   :  { %v337_v45 = vadd.f32 %v336_v43, %v260_v41 }
 0x284   :  { %v2967_v44 = vpop.f32.mrf.mxu1 }
 0x286   :  { %v413_v46 = vpop.f32.mrf.mxu1 }
 0x287   :  { %v417_v48 = vadd.f32 %v413_v46, %v337_v45 }
 0x288   :  { %v2972_v49 = vpop.f32.mrf.mxu1 }
 0x289   :  { %v422_v50 = vadd.f32 %v420_v47, %v417_v48 }
 0x28b   :  { %vm423_vm3 = vcmp.ge.f32.partialorder %v422_v50, 0.0  ;;  %v424_v51 = vmul.f32 0.01, %v422_v50 }
 0x28d   :  { %v425_v52 = vsel %vm423_vm3, %v422_v50, %v424_v51 }
 0x28e   :  { %2823 = vmatmul.mubr.msk.f32.vlgmr.msra.gmra.mxu1 %vm442_vm4, %v425_v52 }
 0x28f   :  { %2975 = vmatprep.mubr.msk.f32.mxu1 %vm3235_vm0, %v3234_v17 }
 0x34e   :  { %v512_v54 = vpop.f32.mrf.mxu1 }
 0x34f   :  { %520 = vrot.lane.b32.xlu0 %v512_v54, %s3236_s0 }
 0x350   :  { %v514_v61 = vpop.f32.mrf.mxu1 }
 0x353   :  { %596 = vrot.lane.b32.xlu0 %v3307_v0, %s3245_s14  ;;  %s3263_s14 = smov 80  }
 0x357   :  { %760 = vrot.lane.b32.xlu0 %v3307_v0, %s3242_s13  ;;  %s3261_s13 = smov 10  }
 0x35b   :  { %864 = vrot.lane.b32.xlu0 %v3537_v25, %s3236_s0 }
 0x35f   :  { %751 = vperm.xlu0 %3192, %v3307_v0  }
 0x363   :  { %858 = vrot.lane.b32.xlu0 %v435_v31, %s3236_s0  ;;  %v3664_v31 = vld [vmem:[%s3839_s2 + $0x10] sm:$0xff] }
 0x367   :  { %854 = vrot.lane.b32.xlu0 %v431_v35, %s3236_s0 }
 0x36b   :  { %850 = vrot.lane.b32.xlu0 %v427_v39, %s3236_s0 }
 0x3c1   :  { %v521_v58 = vpop.permute.xlu0 %520 }
 0x3c2   :  { %2974 = vmatpush3.msk.msra.mxu1 %vm191_vm1, %v521_v58 }
 0x3c3   :  { %2976 = vmatmul.mubr.msk.f32.vlgmr.msra.gmra.mxu1 %vm188_vm2, %v518_v57  ;;  %2978 = vmatprep.subr.mxu1 %v3234_v17 }
 0x3c4   :  { %2979 = vmatpush3.msk.msra.mxu1 %vm191_vm1, %v512_v54  ;;  %2980 = vmatprep.mubr.msk.f32.mxu1 %vm3235_vm0, %v3234_v17 }
 0x3c5   :  { %2983 = vmatprep.subr.mxu1 %v3234_v17  ;;  %v597_v60 = vpop.permute.xlu0 %596 }
 0x3c7   :  { %2981 = vmatmul.mubr.msk.f32.vlgmr.msra.gmra.mxu1 %vm188_vm2, %v597_v60 }
 0x3c8   :  { %2984 = vmatpush3.msk.msra.mxu1 %vm191_vm1, %v514_v61  ;;  %2985 = vmatprep.mubr.msk.f32.mxu1 %vm3235_vm0, %v3234_v17 }
 0x3c9   :  { %2988 = vmatprep.subr.mxu1 %v3234_v17  ;;  %v761_v63 = vpop.permute.xlu0 %760 }
 0x3ca   :  { %v765_v1 = vsel %vm764_vm5, %v761_v63, %v763_v62 }
 0x3cb   :  { %2986 = vmatmul.mubr.msk.f32.vlgmr.msra.gmra.mxu1 %vm188_vm2, %v673_v59 }
 0x3cc   :  { %2989 = vmatpush3.msk.msra.mxu1 %vm191_vm1, %v3518_v20  ;;  %2990 = vmatprep.mubr.msk.f32.mxu1 %vm3235_vm0, %v3234_v17 }
 0x3cd   :  { %v865_v2 = vpop.permute.xlu0 %864  ;;  %2993 = vmatprep.subr.mxu1 %v3234_v17 }
 0x3cf   :  { %2991 = vmatmul.mubr.msk.f32.vlgmr.msra.gmra.mxu1 %vm188_vm2, %v765_v1 }
 0x3d0   :  { %2994 = vmatpush3.msra.mxu1 %v865_v2  ;;  %3009 = vmatprep.mubr.msk.f32.mxu1 %vm3235_vm0, %v3234_v17 }
 0x3d1   :  { %2995 = vmatprep.subr.mxu1 %v3234_v17 }
 0x3d2   :  { %2996 = vmatpush3.msra.mxu1 %v863_v3 }
 0x3d3   :  { %2997 = vmatprep.subr.mxu1 %v3234_v17 }
 0x3d4   :  { %2998 = vmatpush3.msra.mxu1 %v861_v6 }
 0x3d5   :  { %2999 = vmatprep.subr.mxu1 %v3234_v17 }
 0x3da   :  { %v752_v5 = vpop.permute.xlu0 %751 }
 0x3de   :  { %v859_v7 = vpop.permute.xlu0 %858 }
 0x3df   :  { %3000 = vmatpush3.msra.mxu1 %v859_v7 }
 0x3e0   :  { %3001 = vmatprep.subr.mxu1 %v3234_v17 }
 0x3e1   :  { %3002 = vmatpush3.msra.mxu1 %v857_v8 }
 0x3e2   :  { %v855_v9 = vpop.permute.xlu0 %854  ;;  %3003 = vmatprep.subr.mxu1 %v3234_v17 }
 0x3e3   :  { %3004 = vmatpush3.msra.mxu1 %v855_v9 }
 0x3e4   :  { %3005 = vmatprep.subr.mxu1 %v3234_v17 }
 0x3e5   :  { %3006 = vmatpush3.msra.mxu1 %v853_v10 }
 0x3e6   :  { %v851_v11 = vpop.permute.xlu0 %850  ;;  %3007 = vmatprep.subr.mxu1 %v3234_v17 }
 0x3e7   :  { %3008 = vmatpush3.msra.mxu1 %v851_v11 }
 0x3e8   :  { %3012 = vmatprep.subr.mxu1 %v3234_v17 }
 0x483   :  { %v592_v12 = vpop.f32.mrf.mxu1 }
 0x485   :  { %v2977_v13 = vpop.f32.mrf.mxu1 }
 0x487   :  { %v668_v14 = vpop.f32.mrf.mxu1 }
 0x488   :  { %v669_v16 = vadd.f32 %v668_v14, %v592_v12 }
 0x489   :  { %v2982_v15 = vpop.f32.mrf.mxu1 }
 0x48b   :  { %v745_v18 = vpop.f32.mrf.mxu1 }
 0x48c   :  { %v749_v19 = vadd.f32 %v745_v18, %v669_v16 }
 0x48d   :  { %v2987_v20 = vpop.f32.mrf.mxu1 }
 0x48e   :  { %v754_v22 = vadd.f32 %v752_v5, %v749_v19  ;;  %v3744_v19 = vld [vmem:[%s3839_s2 + $0x38] sm:$0xff] }
 0x48f   :  { %v834_v21 = vpop.f32.mrf.mxu1  ;;  %v3751_v20 = vld [vmem:[%s3839_s2 + $0x18] sm:$0xff]  ;;  %s3257_s2 = smov 40  }
 0x490   :  { %v835_v23 = vadd.f32 %v834_v21, %v757_v4 }
 0x491   :  { %v2992_v24 = vpop.f32.mrf.mxu1 }
 0x492   :  { %v838_v25 = vadd.f32 %v835_v23, %v754_v22 }
 0x494   :  { %vm839_vm6 = vcmp.ge.f32.partialorder %v838_v25, 0.0  ;;  %v840_v26 = vmul.f32 0.01, %v838_v25 }
 0x496   :  { %v841_v27 = vsel %vm839_vm6, %v838_v25, %v840_v26  ;;  %v3256_v25 = vmov 6  }
 0x497   :  { %3010 = vmatmul.mubr.msk.f32.vlgmr.msra.gmra.mxu1 %vm442_vm4, %v841_v27  ;;  %3196 = vset.pattern.permute.xlu0 %v3256_v25 }
 0x498   :  { %3020 = vmatprep.mubr.msk.f32.mxu1 %vm3235_vm0, %v3234_v17  ;;  %3013 = vmatpush3.msra.mxu1 %v3643_v28 }
 0x499   :  { %3014 = vmatprep.subr.mxu1 %v3234_v17 }
 0x49a   :  { %3015 = vmatpush3.msra.mxu1 %v3648_v29 }
 0x49b   :  { %3016 = vmatprep.subr.mxu1 %v3234_v17 }
 0x49c   :  { %3017 = vmatpush3.msra.mxu1 %v3655_v30 }
 0x49d   :  { %3018 = vmatprep.subr.mxu1 %v3234_v17 }
 0x49e   :  { %3019 = vmatpush3.msra.mxu1 %v3664_v31 }
 0x49f   :  { %3028 = vmatprep.subr.mxu1 %v3234_v17 }
 0x557   :  { %v943_v32 = vpop.f32.mrf.mxu1 }
 0x558   :  { %948 = vrot.lane.b32.xlu1 %v943_v32, %s3246_s23 }
 0x559   :  { %v3011_v33 = vpop.f32.mrf.mxu1 }
 0x55c   :  { %1030 = vrot.lane.b32.xlu1 %v3307_v0, %s3247_s24 }
 0x5ca   :  { %v949_v34 = vpop.permute.xlu1 %948 }
 0x5cb   :  { %v3670_v35 = vmax.f32 %v943_v32, %v949_v34  ;;  %v3208_v32 = vld [vmem:[%s3840_s3] sm:$0x3f]  ;;  %s3260_s3 = smov 22  }
 0x5cd   :  { %3021 = vmatmul.mubr.msk.f32.vlgmr.msra.gmra.mxu1 %vm956_vm7, %v3670_v35 }
 0x5ce   :  { %3030 = vmatprep.mubr.msk.f32.mxu1 %vm3235_vm0, %v3234_v17  ;;  %v1031_v39 = vpop.permute.xlu1 %1030 }
 0x68d   :  { %v1026_v37 = vpop.f32.mrf.mxu1 }
 0x68e   :  { %1187 = vrot.lane.b32.xlu1 %v1026_v37, %s3236_s0  ;;  %1033 = vrot.lane.b32.xlu0 %v1026_v37, %s3246_s23 }
 0x68f   :  { %3029 = vmatpush3.msk.msra.mxu1 %vm191_vm1, %v1026_v37  ;;  %v3022_v38 = vpop.f32.mrf.mxu1 }
 0x690   :  { %3038 = vmatprep.subr.mxu1 %v3234_v17 }
 0x692   :  { %1109 = vrot.lane.b32.xlu0 %v3307_v0, %s3249_s1  ;;  %1265 = vperm.xlu1 %3194, %v3307_v0  }
 0x696   :  { %1185 = vrot.lane.b32.xlu0 %v3307_v0, %s3236_s0  ;;  %1345 = vrot.lane.b32.xlu1 %v3307_v0, %s3250_s25 }
 0x697   :  { %3195 = vset.pattern.permute.xlu1 %v3251_v56 }
 0x700   :  { %v1034_v40 = vpop.permute.xlu0 %1033  ;;  %v1188_v41 = vpop.permute.xlu1 %1187 }
 0x701   :  { %3024 = vmatpush3.msk.msra.mxu0 %vm191_vm1, %v1034_v40 }
 0x702   :  { %3026 = vmatmul.mubr.msk.f32.vlgmr.msra.gmra.mxu0 %vm188_vm2, %v1031_v39  ;;  %3033 = vmatprep.subr.mxu0 %v3234_v17 }
 0x703   :  { %3034 = vmatpush3.msk.msra.mxu0 %vm191_vm1, %v1188_v41  ;;  %3035 = vmatprep.mubr.msk.f32.mxu0 %vm3235_vm0, %v3234_v17 }
 0x704   :  { %v1110_v42 = vpop.permute.xlu0 %1109  ;;  %3049 = vmatprep.subr.mxu0 %v3234_v17 }
 0x705   :  { %3031 = vmatmul.mubr.msk.f32.vlgmr.msra.gmra.mxu1 %vm188_vm2, %v1110_v42 }
 0x706   :  { %3039 = vmatpush3.msra.mxu1 %v3643_v28  ;;  %3046 = vmatprep.mubr.msk.f32.mxu1 %vm3235_vm0, %v3234_v17 }
 0x707   :  { %3040 = vmatprep.subr.mxu1 %v3234_v17 }
 0x708   :  { %v1186_v43 = vpop.permute.xlu0 %1185  ;;  %3041 = vmatpush3.msra.mxu1 %v3648_v29 }
 0x709   :  { %3036 = vmatmul.mubr.msk.f32.vlgmr.msra.gmra.mxu0 %vm188_vm2, %v1186_v43  ;;  %3042 = vmatprep.subr.mxu1 %v3234_v17 }
 0x70a   :  { %3043 = vmatpush3.msra.mxu1 %v3655_v30  ;;  %3051 = vmatprep.mubr.msk.f32.mxu0 %vm3235_vm0, %v3234_v17 }
 0x70b   :  { %3044 = vmatprep.subr.mxu1 %v3234_v17 }
 0x70c   :  { %3045 = vmatpush3.msra.mxu1 %v3664_v31 }
 0x70d   :  { %3059 = vmatprep.subr.mxu1 %v3234_v17  ;;  %v1266_v50 = vpop.permute.xlu1 %1265 }
 0x711   :  { %v1346_v59 = vpop.permute.xlu1 %1345 }
 0x7c2   :  { %v1105_v44 = vpop.f32.mrf.mxu0 }
 0x7c4   :  { %v3027_v45 = vpop.f32.mrf.mxu0 }
 0x7c5   :  { %v1181_v46 = vpop.f32.mrf.mxu1  ;;  %v3262_v45 = vmov 7  }
 0x7c6   :  { %v1182_v48 = vadd.f32 %v1181_v46, %v1105_v44 }
 0x7c7   :  { %v3032_v47 = vpop.f32.mrf.mxu1 }
 0x7c9   :  { %v1259_v49 = vpop.f32.mrf.mxu0 }
 0x7ca   :  { %v1263_v51 = vadd.f32 %v1259_v49, %v1182_v48 }
 0x7cb   :  { %v3037_v52 = vpop.f32.mrf.mxu0 }
 0x7cc   :  { %v1268_v53 = vadd.f32 %v1266_v50, %v1263_v51 }
 0x7ce   :  { %vm1269_vm8 = vcmp.ge.f32.partialorder %v1268_v53, 0.0  ;;  %v1270_v54 = vmul.f32 0.01, %v1268_v53 }
 0x7d0   :  { %v1271_v55 = vsel %vm1269_vm8, %v1268_v53, %v1270_v54 }
 0x7d1   :  { %3047 = vmatmul.mubr.msk.f32.vlgmr.msra.gmra.mxu1 %vm956_vm7, %v1271_v55 }
 0x7d2   :  { %3061 = vmatprep.mubr.msk.f32.mxu1 %vm3235_vm0, %v3234_v17 }
 0x891   :  { %v1341_v57 = vpop.f32.mrf.mxu1 }
 0x892   :  { %1502 = vrot.lane.b32.xlu1 %v1341_v57, %s3236_s0  ;;  %1348 = vrot.lane.b32.xlu0 %v1341_v57, %s3246_s23 }
 0x893   :  { %v3048_v58 = vpop.f32.mrf.mxu1 }
 0x896   :  { %1424 = vrot.lane.b32.xlu0 %v3307_v0, %s3252_s27  ;;  %1580 = vperm.xlu1 %3195, %v3307_v0  }
 0x89a   :  { %1500 = vrot.lane.b32.xlu0 %v3307_v0, %s3253_s28  ;;  %1596 = vrot.lane.b32.xlu1 %v3648_v29, %s3254_s29 }
 0x89b   :  { %3197 = vset.pattern.permute.xlu1 %v3262_v45 }
 0x89e   :  { %1598 = vrot.lane.b32.xlu0 %v3643_v28, %s3254_s29  ;;  %1592 = vrot.lane.b32.xlu1 %v3664_v31, %s3254_s29 }
 0x8a2   :  { %1594 = vrot.lane.b32.xlu0 %v3655_v30, %s3254_s29 }
 0x904   :  { %v1503_v60 = vpop.permute.xlu1 %1502  ;;  %v1349_v61 = vpop.permute.xlu0 %1348 }
 0x905   :  { %3050 = vmatpush3.msk.msra.mxu0 %vm191_vm1, %v1349_v61  ;;  %3060 = vmatpush3.msk.msra.mxu1 %vm191_vm1, %v1503_v60 }
 0x906   :  { %3052 = vmatmul.mubr.msk.f32.vlgmr.msra.gmra.mxu0 %vm188_vm2, %v1346_v59  ;;  %3054 = vmatprep.subr.mxu0 %v3234_v17 }
 0x907   :  { %3055 = vmatpush3.msk.msra.mxu0 %vm191_vm1, %v1341_v57  ;;  %3056 = vmatprep.mubr.msk.f32.mxu0 %vm3235_vm0, %v3234_v17 }
 0x908   :  { %v1425_v62 = vpop.permute.xlu0 %1424  ;;  %3064 = vmatprep.subr.mxu0 %v3234_v17  ;;  %3075 = vmatprep.subr.mxu1 %v3234_v17 }
 0x90a   :  { %3057 = vmatmul.mubr.msk.f32.vlgmr.msra.gmra.mxu0 %vm188_vm2, %v1425_v62 }
 0x90b   :  { %3072 = vmatprep.mubr.msk.f32.mxu0 %vm3235_vm0, %v3234_v17 }
 0x90c   :  { %v1501_v63 = vpop.permute.xlu0 %1500 }
 0x90d   :  { %3062 = vmatmul.mubr.msk.f32.vlgmr.msra.gmra.mxu1 %vm188_vm2, %v1501_v63 }
 0x90e   :  { %3079 = vmatprep.mubr.msk.f32.mxu1 %vm3235_vm0, %v3234_v17  ;;  %3076 = vmatpush3.msra.mxu1 %v3744_v19 }
 0x90f   :  { %3077 = vmatprep.subr.mxu1 %v3234_v17 }
 0x910   :  { %v1599_v2 = vpop.permute.xlu0 %1598  ;;  %3078 = vmatpush3.msra.mxu1 %v3751_v20 }
 0x911   :  { %v1581_v1 = vpop.permute.xlu1 %1580  ;;  %3065 = vmatpush3.msra.mxu0 %v1599_v2  ;;  %3082 = vmatprep.subr.mxu1 %v3234_v17 }
 0x912   :  { %3066 = vmatprep.subr.mxu0 %v3234_v17 }
 0x914   :  { %v1595_v4 = vpop.permute.xlu0 %1594 }
 0x915   :  { %v1597_v3 = vpop.permute.xlu1 %1596 }
 0x916   :  { %3067 = vmatpush3.msra.mxu0 %v1597_v3 }
 0x917   :  { %3068 = vmatprep.subr.mxu0 %v3234_v17 }
 0x918   :  { %3069 = vmatpush3.msra.mxu0 %v1595_v4 }
 0x919   :  { %v1593_v5 = vpop.permute.xlu1 %1592  ;;  %3070 = vmatprep.subr.mxu0 %v3234_v17 }
 0x91a   :  { %3071 = vmatpush3.msra.mxu0 %v1593_v5  ;;  %v2402_v5 = vld [vmem:[%s3841_s4] sm:$0xff] }
 0x91b   :  { %3087 = vmatprep.subr.mxu0 %v3234_v17 }
 0x9c6   :  { %v1420_v6 = vpop.f32.mrf.mxu0 }
 0x9c8   :  { %v3053_v7 = vpop.f32.mrf.mxu0 }
 0x9ca   :  { %v1496_v8 = vpop.f32.mrf.mxu0 }
 0x9cb   :  { %v1497_v9 = vadd.f32 %v1496_v8, %v1420_v6 }
 0x9cc   :  { %v3058_v10 = vpop.f32.mrf.mxu0 }
 0x9cd   :  { %v1574_v11 = vpop.f32.mrf.mxu1 }
 0x9ce   :  { %v1578_v12 = vadd.f32 %v1574_v11, %v1497_v9  ;;  %v3267_v9 = vmov 24  }
 0x9cf   :  { %v3063_v13 = vpop.f32.mrf.mxu1 }
 0x9d0   :  { %v1583_v14 = vadd.f32 %v1581_v1, %v1578_v12 }
 0x9d2   :  { %v1584_v15 = vadd.f32 %v1583_v14, %v3670_v35  ;;  %v3271_v14 = vmov 25  }
 0x9d4   :  { %v1586_v16 = vmul.f32 0.01, %v1584_v15  ;;  %vm1585_vm9 = vcmp.ge.f32.partialorder %v1584_v15, 0.0 }
 0x9d6   :  { %v1587_v18 = vsel %vm1585_vm9, %v1584_v15, %v1586_v16  ;;  %v3272_v15 = vmov 26  }
 0x9d7   :  { %3073 = vmatmul.mubr.msk.f32.vlgmr.msra.gmra.mxu0 %vm956_vm7, %v1587_v18 }
 0x9d8   :  { %3089 = vmatprep.mubr.msk.f32.mxu0 %vm3235_vm0, %v3234_v17 }
 0xa97   :  { %v1673_v21 = vpop.f32.mrf.mxu0 }
 0xa98   :  { %1678 = vrot.lane.b32.xlu0 %v1673_v21, %s3239_s26 }
 0xa99   :  { %v3074_v22 = vpop.f32.mrf.mxu0 }
 0xa9c   :  { %1758 = vrot.lane.b32.xlu0 %v3307_v0, %s3255_s8 }
 0xb0a   :  { %v1679_v23 = vpop.permute.xlu0 %1678 }
 0xb0b   :  { %v3757_v24 = vmax.f32 %v1673_v21, %v1679_v23 }
 0xb0d   :  { %3080 = vmatmul.mubr.msk.f32.vlgmr.msra.gmra.mxu1 %vm1684_vm10, %v3757_v24 }
 0xb0e   :  { %3084 = vmatprep.mubr.msk.f32.mxu1 %vm3235_vm0, %v3234_v17  ;;  %v1759_v28 = vpop.permute.xlu0 %1758 }
 0xbcd   :  { %v1754_v26 = vpop.f32.mrf.mxu1 }
 0xbce   :  { %1915 = vrot.lane.b32.xlu0 %v1754_v26, %s3246_s23  ;;  %1761 = vrot.lane.b32.xlu1 %v1754_v26, %s3239_s26 }
 0xbcf   :  { %3088 = vmatpush3.msk.msra.mxu0 %vm191_vm1, %v1754_v26  ;;  %v3081_v27 = vpop.f32.mrf.mxu1 }
 0xbd0   :  { %3097 = vmatprep.subr.mxu0 %v3234_v17 }
 0xbd2   :  { %1837 = vrot.lane.b32.xlu1 %v3307_v0, %s3257_s2  ;;  %1993 = vperm.xlu0 %3196, %v3307_v0  }
 0xbd6   :  { %1913 = vrot.lane.b32.xlu1 %v3307_v0, %s3258_s9  ;;  %2152 = vrot.lane.b32.xlu0 %v3208_v32, %s3260_s3 }
 0xbd7   :  { %3198 = vset.pattern.permute.xlu0 %v3267_v9 }
 0xbda   :  { %2073 = vrot.lane.b32.xlu1 %v3208_v32, %s3259_s12  ;;  %2228 = vrot.lane.b32.xlu0 %v3208_v32, %s3261_s13 }
 0xbde   :  { %2320 = vrot.lane.b32.xlu0 %v3744_v19, %s3263_s14 }
 0xc40   :  { %v1762_v29 = vpop.permute.xlu1 %1761  ;;  %v1916_v30 = vpop.permute.xlu0 %1915 }
 0xc41   :  { %3083 = vmatpush3.msk.msra.mxu1 %vm191_vm1, %v1762_v29 }
 0xc42   :  { %3085 = vmatmul.mubr.msk.f32.vlgmr.msra.gmra.mxu1 %vm188_vm2, %v1759_v28  ;;  %3092 = vmatprep.subr.mxu1 %v3234_v17 }
 0xc43   :  { %3093 = vmatpush3.msk.msra.mxu1 %vm191_vm1, %v1916_v30  ;;  %3094 = vmatprep.mubr.msk.f32.mxu1 %vm3235_vm0, %v3234_v17 }
 0xc44   :  { %v1838_v31 = vpop.permute.xlu1 %1837  ;;  %3104 = vmatprep.subr.mxu1 %v3234_v17 }
 0xc45   :  { %3090 = vmatmul.mubr.msk.f32.vlgmr.msra.gmra.mxu0 %vm188_vm2, %v1838_v31 }
 0xc46   :  { %3098 = vmatpush3.msra.mxu0 %v3744_v19  ;;  %3101 = vmatprep.mubr.msk.f32.mxu0 %vm3235_vm0, %v3234_v17 }
 0xc47   :  { %3099 = vmatprep.subr.mxu0 %v3234_v17 }
 0xc48   :  { %v1914_v0 = vpop.permute.xlu1 %1913  ;;  %3100 = vmatpush3.msra.mxu0 %v3751_v20 }
 0xc49   :  { %3095 = vmatmul.mubr.msk.f32.vlgmr.msra.gmra.mxu1 %vm188_vm2, %v1914_v0  ;;  %3109 = vmatprep.subr.mxu0 %v3234_v17 }
 0xc4a   :  { %3106 = vmatprep.mubr.msk.f32.mxu1 %vm3235_vm0, %v3234_v17 }
 0xc4c   :  { %v2074_v49 = vpop.permute.xlu1 %2073 }
 0xc4d   :  { %v1994_v39 = vpop.permute.xlu0 %1993 }
 0xc51   :  { %v2153_v46 = vpop.permute.xlu0 %2152 }
 0xc55   :  { %v2229_v51 = vpop.permute.xlu0 %2228 }
 0xc59   :  { %v2321_v54 = vpop.permute.xlu0 %2320 }
 0xd02   :  { %v1833_v33 = vpop.f32.mrf.mxu1 }
 0xd04   :  { %v3086_v34 = vpop.f32.mrf.mxu1 }
 0xd05   :  { %v1909_v35 = vpop.f32.mrf.mxu0 }
 0xd06   :  { %v1910_v37 = vadd.f32 %v1909_v35, %v1833_v33 }
 0xd07   :  { %v3091_v36 = vpop.f32.mrf.mxu0 }
 0xd09   :  { %v1987_v38 = vpop.f32.mrf.mxu1 }
 0xd0a   :  { %v1991_v40 = vadd.f32 %v1987_v38, %v1910_v37 }
 0xd0b   :  { %v3096_v41 = vpop.f32.mrf.mxu1 }
 0xd0c   :  { %v1996_v42 = vadd.f32 %v1994_v39, %v1991_v40 }
 0xd0e   :  { %vm1997_vm11 = vcmp.ge.f32.partialorder %v1996_v42, 0.0  ;;  %v1998_v43 = vmul.f32 0.01, %v1996_v42 }
 0xd10   :  { %v1999_v44 = vsel %vm1997_vm11, %v1996_v42, %v1998_v43 }
 0xd11   :  { %3102 = vmatmul.mubr.msk.f32.vlgmr.msra.gmra.mxu0 %vm1684_vm10, %v1999_v44 }
 0xd12   :  { %3111 = vmatprep.mubr.msk.f32.mxu0 %vm3235_vm0, %v3234_v17 }
 0xdd1   :  { %v2069_v47 = vpop.f32.mrf.mxu0 }
 0xdd2   :  { %2076 = vrot.lane.b32.xlu1 %v2069_v47, %s3239_s26  ;;  %3110 = vmatpush3.msk.msra.mxu0 %vm191_vm1, %v2069_v47 }
 0xdd3   :  { %v3103_v48 = vpop.f32.mrf.mxu0  ;;  %3112 = vmatmul.mubr.msk.f32.vlgmr.msra.gmra.mxu0 %vm188_vm2, %v2153_v46  ;;  %3119 = vmatprep.subr.mxu0 %v3234_v17 }
 0xdd4   :  { %3123 = vmatprep.mubr.msk.f32.mxu0 %vm3235_vm0, %v3234_v17  ;;  %3120 = vmatpush3.msra.mxu0 %v2321_v54 }
 0xdd5   :  { %3121 = vmatprep.subr.mxu0 %v3234_v17 }
 0xdd6   :  { %2230 = vrot.lane.b32.xlu1 %v2069_v47, %s3246_s23  ;;  %s3273_s23 = smov [#allocation2]  }
 0xdd7   :  { %s2809_s24 = sshll.u32 %s3273_s23, 4  ;;  %s2810_s24 = int_to_ptr.vmem [resolvable:$true] %s2809_s24 }
 0xdd8   :  { %s3209_s1 = scalar_lea.vmem %s2810_s24, 16  ;;  %s3213_s25 = scalar_lea.vmem %s2810_s24, 32 }
 0xdd9   :  { %p3210_p0 = scmp.ne.s32.totalorder %s2810_s24, %s3209_s1  ;;  %p3214_p1 = scmp.lt.s32.totalorder %s2810_s24, %s2810_s24 }
 0xdda   :  { %2308 = vperm.xlu1 %3197, %v3208_v32   ;;  %p3215_p2 = scmp.lt.s32.totalorder %s3213_s25, %s3209_s1 }
 0xddc   :  { %p3216_p3 = por %p3215_p2, %p3214_p1 }
 0xdde   :  { %2318 = vrot.lane.b32.xlu1 %v3751_v20, %s3263_s14  ;;  %p3217_p4 = pnand %p3216_p3, %p3210_p0 }
 0xddf   :  { %3199 = vset.pattern.permute.xlu1 %v3267_v9 }
 0xe44   :  { %v2077_v50 = vpop.permute.xlu1 %2076 }
 0xe45   :  { %3105 = vmatpush3.msk.msra.mxu1 %vm191_vm1, %v2077_v50 }
 0xe46   :  { %3107 = vmatmul.mubr.msk.f32.vlgmr.msra.gmra.mxu1 %vm188_vm2, %v2074_v49  ;;  %3114 = vmatprep.subr.mxu1 %v3234_v17 }
 0xe47   :  { %3116 = vmatprep.mubr.msk.f32.mxu1 %vm3235_vm0, %v3234_v17  ;;  %v2403_v17 = vld [vmem:[%s3841_s4 + $0x8] sm:$0xff]  ;;  %s3269_s4 = smov 126   ;;  %vm2801_vm0 = vcmask 8192  }
 0xe48   :  { %v2231_v52 = vpop.permute.xlu1 %2230  ;;  %2500 = vrot.lane.b32.xlu1 %v2403_v17, %s3264_s18 }
 0xe49   :  { %3115 = vmatpush3.msk.msra.mxu1 %vm191_vm1, %v2231_v52 }
 0xe4a   :  { %3117 = vmatmul.mubr.msk.f32.vlgmr.msra.gmra.mxu1 %vm188_vm2, %v2229_v51 }
 0xe4b   :  { %3128 = vmatprep.mubr.msk.f32.mxu1 %vm188_vm2, %v2402_v5 }
 0xe4c   :  { %2587 = vrot.lane.b32.xlu1 %v2402_v5, %s3265_s19 }
 0xe55   :  { %v2309_v53 = vpop.permute.xlu1 %2308 }
 0xe59   :  { %v2319_v55 = vpop.permute.xlu1 %2318 }
 0xe5a   :  { %3122 = vmatpush3.msra.mxu0 %v2319_v55 }
 0xe93   :  { %v2224_v56 = vpop.f32.mrf.mxu0 }
 0xe95   :  { %v3113_v57 = vpop.f32.mrf.mxu0 }
 0xeba   :  { %v2501_v8 = vpop.permute.xlu1 %2500 }
 0xebe   :  { %v2588_v13 = vpop.permute.xlu1 %2587 }
 0xf06   :  { %v2148_v58 = vpop.f32.mrf.mxu1 }
 0xf07   :  { %v2225_v60 = vadd.f32 %v2224_v56, %v2148_v58 }
 0xf08   :  { %v3108_v59 = vpop.f32.mrf.mxu1 }
 0xf0a   :  { %v2302_v61 = vpop.f32.mrf.mxu1 }
 0xf0b   :  { %v2306_v62 = vadd.f32 %v2302_v61, %v2225_v60 }
 0xf0c   :  { %v3118_v63 = vpop.f32.mrf.mxu1 }
 0xf0d   :  { %v2311_v1 = vadd.f32 %v2309_v53, %v2306_v62 }
 0xf0f   :  { %v2312_v2 = vadd.f32 %v2311_v1, %v3757_v24 }
 0xf11   :  { %vm2313_vm12 = vcmp.ge.f32.partialorder %v2312_v2, 0.0  ;;  %v2314_v3 = vmul.f32 0.01, %v2312_v2 }
 0xf13   :  { %v2315_v4 = vsel %vm2313_vm12, %v2312_v2, %v2314_v3 }
 0xf14   :  { %3124 = vmatmul.mubr.msk.f32.vlgmr.msra.gmra.mxu0 %vm1684_vm10, %v2315_v4 }
 0xfd4   :  { %v2393_v6 = vpop.f32.mrf.mxu0 }
 0xfd5   :  { %2398 = vrot.lane.b32.xlu0 %v2393_v6, %s3266_s20 }
 0xfd6   :  { %v3125_v7 = vpop.f32.mrf.mxu0 }
 0xfd9   :  { %2498 = vrot.lane.b32.xlu0 %v2402_v5, %s3264_s18 }
 0xfdd   :  { %2589 = vrot.lane.b32.xlu0 %v2403_v17, %s3265_s19 }
0x1047   :  { %v2399_v10 = vpop.permute.xlu0 %2398 }
0x1048   :  { %v2401_v11 = vmax.f32 %v2393_v6, %v2399_v10 }
0x104a   :  { %2591 = vrot.lane.b32.xlu0 %v2401_v11, %s3268_s21  ;;  %2502 = vrot.lane.b32.xlu1 %v2401_v11, %s3269_s4 }
0x104b   :  { %3126 = vmatprep.subr.msk.mxu1 %vm191_vm1, %v2401_v11  ;;  %v2499_v12 = vpop.permute.xlu0 %2498 }
0x104c   :  { %3127 = vmatpush3.msk.msra.mxu1 %vm191_vm1, %v2401_v11  ;;  %3133 = vmatprep.mubr.msk.f32.mxu0 %vm188_vm2, %v2499_v12 }
0x104d   :  { %3129 = vmatmul.mubr.msk.f32.vlgmr.msra.gmra.mxu1 %vm188_vm2, %v2403_v17 }
0x104e   :  { %2680 = vrot.lane.b32.xlu1 %v2401_v11, %s3264_s18  ;;  %2676 = vrot.lane.b32.xlu0 %v2402_v5, %s3270_s22 }
0x104f   :  { %3138 = vmatprep.mubr.msk.f32.mxu1 %vm188_vm2, %v2588_v13  ;;  %v2590_v16 = vpop.permute.xlu0 %2589 }
0x1052   :  { %2678 = vrot.lane.b32.xlu1 %v2403_v17, %s3270_s22  ;;  %2489 = vperm.xlu0 %3198, %v2402_v5  }
0x1056   :  { %2493 = vperm.xlu1 %3199, %v2403_v17   ;;  %3201 = vset.pattern.permute.xlu0 %v3271_v14 }
0x1057   :  { %2776 = vperm.xlu0 %3201, %v2403_v17  }
0x105a   :  { %3200 = vset.pattern.permute.xlu1 %v3271_v14 }
0x105b   :  { %2772 = vperm.xlu1 %3200, %v2402_v5   ;;  %3203 = vset.pattern.permute.xlu0 %v3272_v15 }
0x105f   :  { %3202 = vset.pattern.permute.xlu1 %v3272_v15 }
0x1060   :  { %2792 = vperm.xlu1 %3202, %v2402_v5  }
0x10bc   :  { %v2503_v18 = vpop.permute.xlu1 %2502  ;;  %v2592_v19 = vpop.permute.xlu0 %2591 }
0x10bd   :  { %3131 = vmatprep.subr.msk.mxu0 %vm191_vm1, %v2503_v18  ;;  %3136 = vmatprep.subr.msk.mxu1 %vm191_vm1, %v2592_v19 }
0x10be   :  { %3132 = vmatpush3.msk.msra.mxu0 %vm191_vm1, %v2503_v18  ;;  %3137 = vmatpush3.msk.msra.mxu1 %vm191_vm1, %v2592_v19 }
0x10bf   :  { %3134 = vmatmul.mubr.msk.f32.vlgmr.msra.gmra.mxu0 %vm188_vm2, %v2501_v8  ;;  %3139 = vmatmul.mubr.msk.f32.vlgmr.msra.gmra.mxu1 %vm188_vm2, %v2590_v16 }
0x10c0   :  { %v2681_v20 = vpop.permute.xlu1 %2680  ;;  %v2677_v21 = vpop.permute.xlu0 %2676 }
0x10c1   :  { %3141 = vmatprep.subr.msk.mxu0 %vm191_vm1, %v2681_v20  ;;  %3143 = vmatprep.mubr.msk.f32.mxu0 %vm188_vm2, %v2677_v21 }
0x10c2   :  { %3142 = vmatpush3.msk.msra.mxu0 %vm191_vm1, %v2681_v20 }
0x10c4   :  { %v2679_v22 = vpop.permute.xlu1 %2678 }
0x10c5   :  { %3144 = vmatmul.mubr.msk.f32.vlgmr.msra.gmra.mxu0 %vm188_vm2, %v2679_v22 }
0x10cd   :  { %v2490_v25 = vpop.permute.xlu0 %2489 }
0x10d1   :  { %v2494_v24 = vpop.permute.xlu1 %2493 }
0x10d2   :  { %v2777_v41 = vpop.permute.xlu0 %2776 }
0x10d6   :  { %v2773_v44 = vpop.permute.xlu1 %2772 }
0x10db   :  { %v2793_v56 = vpop.permute.xlu1 %2792 }
0x110d   :  { %v3130_v23 = vpop.f32.mrf.mxu1 }
0x110e   :  { %v2497_v26 = vadd.f32 %v3130_v23, %v2494_v24 }
0x110f   :  { %v2479_v27 = vpop.f32.mrf.mxu1 }
0x1110   :  { %v2496_v28 = vadd.f32 %v2490_v25, %v2479_v27 }
0x117f   :  { %v3135_v29 = vpop.f32.mrf.mxu0  ;;  %v3140_v31 = vpop.f32.mrf.mxu1 }
0x1180   :  { %v2586_v30 = vadd.f32 %v3135_v29, %v2497_v26 }
0x1181   :  { %v2576_v0 = vpop.f32.mrf.mxu0  ;;  %v2665_v34 = vpop.f32.mrf.mxu1 }
0x1182   :  { %v2585_v32 = vadd.f32 %v2576_v0, %v2496_v28  ;;  %v2675_v33 = vadd.f32 %v3140_v31, %v2586_v30 }
0x1184   :  { %v2674_v36 = vadd.f32 %v2665_v34, %v2585_v32 }
0x1185   :  { %v3145_v35 = vpop.f32.mrf.mxu0 }
0x1186   :  { %v2764_v37 = vadd.f32 %v3145_v35, %v2675_v33 }
0x1187   :  { %v2754_v38 = vpop.f32.mrf.mxu0 }
0x1188   :  { %v2768_v39 = vmul.f32 0.01, %v2764_v37  ;;  %v2763_v40 = vadd.f32 %v2754_v38, %v2674_v36  ;;  %vm2766_vm13 = vcmp.ge.f32.partialorder %v2764_v37, 0.0 }
0x118a   :  { %v2767_v42 = vmul.f32 0.01, %v2763_v40  ;;  %v2770_v43 = vsel %vm2766_vm13, %v2764_v37, %v2768_v39  ;;  %vm2765_vm14 = vcmp.ge.f32.partialorder %v2763_v40, 0.0 }
0x118b   :  { %v2780_v45 = vmul.f32 %v2777_v41, %v2770_v43 }
0x118c   :  { %v2769_v46 = vsel %vm2765_vm14, %v2763_v40, %v2767_v42 }
0x118d   :  { %v2779_v47 = vmul.f32 %v2773_v44, %v2769_v46  ;;  %v2783_v48 = vsel %vm2781_vm15, %v2780_v45, 0.0 }
0x118f   :  { %v2782_v49 = vsel %vm2781_vm15, %v2779_v47, 0.0 }
0x1190   :  { %v2784_v50 = vadd.f32 %v2783_v48, %v2782_v49 }
0x1192   :  { %v2785_v51 = vrot.slane %v2784_v50, 4 }
0x1194   :  { %v2786_v52 = vadd.f32 %v2785_v51, %v2784_v50 }
0x1196   :  { %v2787_v53 = vrot.slane %v2786_v52, 2 }
0x1198   :  { %v2788_v54 = vadd.f32 %v2787_v53, %v2786_v52 }
0x119a   :  { %v2789_v55 = vrot.slane %v2788_v54, 1 }
0x119c   :  { %v2790_v57 = vadd.f32 %v2789_v55, %v2788_v54 }
0x119e   :  { %v2795_v58 = vadd.f32 %v2793_v56, %v2790_v57 }
0x11a0   :  { %v2796_v59 = vsub.f32 0.0, %v2795_v58 }
0x11a2   :  { %v2797_v60 = vmul.f32 1.442695, %v2796_v59 }
0x11a4   :  { %3204 = vpow2.f32 %v2797_v60 }
0x11b1   :  { %v3205_v61 = vpop.eup %3204 }
0x11b2   :  { %v2799_v62 = vadd.f32 1.0, %v3205_v61 }
0x11b4   :  { %3206 = vrcp.f32 %v2799_v62 }
0x11c1   :  { %v3207_v63 = vpop.eup %3206 }
0x11c2   :  { %2802 = vst.msk [vmem:[#allocation2] sm:$0x1] %vm2801_vm0, %v3207_v63 }
0x11c3   :  { %3220 = shalt.err (!%p3217_p4)
}
0x11c4   :  { %2812 = dma.vmem_to_hbm [thread:$0]  %s2810_s24, 16, %s3842_s5, [#allocation3]  }
0x11c5   :  { %3229 = dma.done.wait [#allocation3], 16  }
0x11c6   :  { %3230 = vsyncadd [#allocation3], 4294967280 }
0x11c7   :  { %2816 = vsyncpa [#allocation3], 1 }

</bundles_post_ra>
